<compile_context>
chip_gen: v7x
topology: tpu7x:2x2x1
jax: 0.10.0
libtpu: 0.0.40
codegen_flags: <defaults>
</compile_context>

<pallas_src>
import jax
import jax.numpy as jnp
from jax import lax
from jax.experimental import pallas as pl
from jax.experimental.pallas import tpu as pltpu

LANES = 128      # lane width of one vreg row
TM_MAX = 1024    # max sublane rows per grid step (512 KiB per f32 plane block)


def _cdiv(a, b):
    return -(-a // b)


def _round_up(a, b):
    return _cdiv(a, b) * b


def ego_kernel(params_ref,
               x_ref, y_ref, yaw_ref, spd_ref, steer_ref, throt_ref, brake_ref,
               nx_ref, ny_ref, nyaw_ref, nspd_ref):
    # scalar parameters (SMEM), pre-folded in the wrapper:
    steer_gain   = params_ref[0]
    ratio        = params_ref[1]   # rear_wb / (front_wb + rear_wb)
    brake_acc    = params_ref[2]
    throt_w      = params_ref[3]   # weight of nn.Linear(1, 1, bias=False)
    dt           = params_ref[4]
    dt_over_rear = params_ref[5]   # dt / rear_wb

    steer = steer_ref[...]                                    # (TM, 128) f32
    throt = throt_ref[...]
    # brake plane is int8; `.byte()` wrap already applied in the wrapper.
    brake = brake_ref[...].astype(jnp.int32) != 0

    # accel = where(brake, brake_accel, Linear(throt))
    accel = jnp.where(brake, brake_acc, throt * throt_w)

    # beta = arctan(ratio * tan(steer_gain * steer)) -- never compute arctan:
    #   sin(beta) = u * rsqrt(1 + u^2),  cos(beta) = rsqrt(1 + u^2)
    wheel = steer_gain * steer
    u = ratio * jnp.tan(wheel)
    inv = lax.rsqrt(1.0 + u * u)
    sin_b = u * inv
    cos_b = inv

    yaw = yaw_ref[...]
    cy = jnp.cos(yaw)
    sy = jnp.sin(yaw)
    # angle-sum expansion of cos/sin(yaw + beta)
    cos_h = cy * cos_b - sy * sin_b
    sin_h = sy * cos_b + cy * sin_b

    spd = spd_ref[...]
    sdt = spd * dt

    nx_ref[...]   = x_ref[...] + sdt * cos_h
    ny_ref[...]   = y_ref[...] + sdt * sin_h
    nyaw_ref[...] = yaw + spd * sin_b * dt_over_rear
    nspd_ref[...] = jnp.maximum(spd + accel * dt, 0.0)        # F.relu


def ego_forward(locs, yaws, spds, acts, params):
    """locs: (..., 2), yaws: (..., 1), spds: (..., 1), acts: (..., 3).

    params = [front_wb, rear_wb, steer_gain, brake_accel, throt_weight, dt]
    """
    lead = locs.shape[:-1]
    n = 1
    for d in lead:
        n *= d

    # ---- fold scalar algebra once, outside the kernel ----
    front_wb, rear_wb, steer_gain, brake_acc, throt_w, dt = (
        params[0], params[1], params[2], params[3], params[4], params[5])
    ratio = rear_wb / (front_wb + rear_wb)
    dt_over_rear = dt / rear_wb
    kparams = jnp.stack(
        [steer_gain, ratio, brake_acc, throt_w, dt, dt_over_rear]
    ).astype(jnp.float32)

    # ---- lane-dense per-channel planes: (rows_pad, 128) ----
    rows = max(_cdiv(n, LANES), 1)
    # 32-row quantum: satisfies int8 (32,128) min tile and f32 (8,128) tiling.
    rows32 = _round_up(rows, 32)

    # Megacore-friendly tiling: aim for an even grid of >= 2 blocks when there
    # is enough work (v7x has 2 TCs sharded over the "parallel" axis), each
    # block a multiple of 32 rows, capped at TM_MAX rows.
    grid_len = max(1, _cdiv(rows32, TM_MAX))
    if rows32 >= 64:
        grid_len = max(grid_len, 2)
    if grid_len > 1 and grid_len % 2 == 1:
        grid_len += 1
    tm = _round_up(_cdiv(rows32, grid_len), 32)
    rows_pad = tm * grid_len                      # padding <= 32 rows per step
    n_pad = rows_pad * LANES
    pad = n_pad - n

    def plane(x, dtype=jnp.float32):
        flat = x.reshape(-1).astype(dtype)
        if pad:
            flat = jnp.pad(flat, (0, pad))
        return flat.reshape(rows_pad, LANES)

    x_p   = plane(locs[..., 0])
    y_p   = plane(locs[..., 1])
    yaw_p = plane(yaws[..., 0])
    spd_p = plane(spds[..., 0])
    st_p  = plane(acts[..., 0])
    th_p  = plane(acts[..., 1])
    # torch `.byte()` emulation (int32 cast, wrap mod 256) folded into the pad
    # pass; stored as int8 so kernel-side brake traffic is 1 B/elem not 4 B/elem.
    br_p  = plane(acts[..., 2].astype(jnp.int32) & 0xFF, dtype=jnp.int8)

    bspec = pl.BlockSpec((tm, LANES), lambda i: (i, 0))

    out_shape = tuple(
        jax.ShapeDtypeStruct((rows_pad, LANES), jnp.float32) for _ in range(4))

    grid_spec = pltpu.PrefetchScalarGridSpec(
        num_scalar_prefetch=0,
        grid=(grid_len,),
        in_specs=[pl.BlockSpec(memory_space=pltpu.SMEM)]   # params (6,)
                 + [bspec] * 7,                            # 7 input planes
        out_specs=[bspec] * 4,                             # 4 output planes
    )

    nx, ny, nyaw, nspd = pl.pallas_call(
        ego_kernel,
        out_shape=out_shape,
        grid_spec=grid_spec,
        compiler_params=pltpu.CompilerParams(
            dimension_semantics=("parallel",),
            vmem_limit_bytes=48 * 1024 * 1024),
    )(kparams, x_p, y_p, yaw_p, spd_p, st_p, th_p, br_p)

    nx   = nx.reshape(-1)[:n]
    ny   = ny.reshape(-1)[:n]
    nyaw = nyaw.reshape(-1)[:n]
    nspd = nspd.reshape(-1)[:n]

    next_locs = jnp.stack([nx, ny], axis=-1).reshape(*lead, 2)
    next_yaws = nyaw.reshape(*lead, 1)
    next_spds = nspd.reshape(*lead, 1)
    return next_locs, next_yaws, next_spds


def ego_forward_ref(locs, yaws, spds, acts, params):
    """Pure-JAX reference mirroring the PyTorch forward."""
    front_wb, rear_wb, steer_gain, brake_acc, throt_w, dt = [params[i] for i in range(6)]
    steer = acts[..., 0:1]
    throt = acts[..., 1:2]
    brake = (acts[..., 2:3].astype(jnp.int32) & 0xFF) != 0   # torch .byte()
    accel = jnp.where(brake, brake_acc, throt * throt_w)
    wheel = steer_gain * steer
    beta = jnp.arctan(rear_wb / (front_wb + rear_wb) * jnp.tan(wheel))
    next_locs = locs + spds * jnp.concatenate(
        [jnp.cos(yaws + beta), jnp.sin(yaws + beta)], -1) * dt
    next_yaws = yaws + spds / rear_wb * jnp.sin(beta) * dt
    next_spds = jnp.maximum(spds + accel * dt, 0.0)
    return next_locs, next_yaws, next_spds


if __name__ == "__main__":
    key = jax.random.PRNGKey(0)
    k1, k2, k3, k4, k5 = jax.random.split(key, 5)

    B, T = 2, 8  # small batch of rollouts
    locs = jax.random.normal(k1, (B, T, 2), dtype=jnp.float32) * 5.0
    yaws = jax.random.uniform(k2, (B, T, 1), dtype=jnp.float32,
                              minval=-3.0, maxval=3.0)
    spds = jax.random.uniform(k3, (B, T, 1), dtype=jnp.float32,
                              minval=0.0, maxval=10.0)
    steer = jax.random.uniform(k4, (B, T, 1), dtype=jnp.float32,
                               minval=-1.0, maxval=1.0)
    throt = jax.random.uniform(k5, (B, T, 1), dtype=jnp.float32,
                               minval=0.0, maxval=1.0)
    # brake flag: deterministic 0/1 pattern (torch .byte() semantics)
    brake = (jnp.arange(B * T).reshape(B, T, 1) % 3 == 0).astype(jnp.float32)
    acts = jnp.concatenate([steer, throt, brake], axis=-1)  # (B, T, 3)

    # deterministic parameter values (matches EgoModel.__init__ shapes):
    # front_wb=1.0, rear_wb=1.0, steer_gain=1.0, brake_accel=0.0,
    # throt_accel Linear(1,1,bias=False) weight = 0.5, dt = 1/4
    params = jnp.array([1.0, 1.0, 1.0, 0.0, 0.5, 0.25], dtype=jnp.float32)

    out = ego_forward(locs, yaws, spds, acts, params)
    out = jax.block_until_ready(out)

    ref = ego_forward_ref(locs, yaws, spds, acts, params)
    for got, want in zip(out, ref):
        assert got.shape == want.shape, (got.shape, want.shape)
        assert jnp.allclose(got, want, atol=1e-4, rtol=1e-4), \
            f"mismatch: max err {jnp.max(jnp.abs(got - want))}"

    print("KERNEL_OK")
</pallas_src>

<mosaic_0001>
module attributes {stable_mosaic.version = 11 : i64} {
  func.func @ego_kernel(%arg0: i32, %arg1: memref<6xf32, #tpu.memory_space<smem>>, %arg2: memref<32x128xf32, #tpu.memory_space<vmem>>, %arg3: memref<32x128xf32, #tpu.memory_space<vmem>>, %arg4: memref<32x128xf32, #tpu.memory_space<vmem>>, %arg5: memref<32x128xf32, #tpu.memory_space<vmem>>, %arg6: memref<32x128xf32, #tpu.memory_space<vmem>>, %arg7: memref<32x128xf32, #tpu.memory_space<vmem>>, %arg8: memref<32x128xi8, #tpu.memory_space<vmem>>, %arg9: memref<32x128xf32, #tpu.memory_space<vmem>>, %arg10: memref<32x128xf32, #tpu.memory_space<vmem>>, %arg11: memref<32x128xf32, #tpu.memory_space<vmem>>, %arg12: memref<32x128xf32, #tpu.memory_space<vmem>>) attributes {dimension_semantics = [#tpu.dimension_semantics<parallel>], iteration_bounds = array<i64: 1>, scalar_prefetch = 0 : i64, scratch_operands = 0 : i64, tpu.core_type = #tpu.core_type<tc>, window_params = [{transform_indices = @transform_0, window_bounds = array<i64: 6>}, {transform_indices = @transform_1, window_bounds = array<i64: 32, 128>}, {transform_indices = @transform_2, window_bounds = array<i64: 32, 128>}, {transform_indices = @transform_3, window_bounds = array<i64: 32, 128>}, {transform_indices = @transform_4, window_bounds = array<i64: 32, 128>}, {transform_indices = @transform_5, window_bounds = array<i64: 32, 128>}, {transform_indices = @transform_6, window_bounds = array<i64: 32, 128>}, {transform_indices = @transform_7, window_bounds = array<i64: 32, 128>}, {transform_indices = @transform_8, window_bounds = array<i64: 32, 128>}, {transform_indices = @transform_9, window_bounds = array<i64: 32, 128>}, {transform_indices = @transform_10, window_bounds = array<i64: 32, 128>}, {transform_indices = @transform_11, window_bounds = array<i64: 32, 128>}]} {
    %c0 = arith.constant 0 : index
    %0 = memref.load %arg1[%c0] : memref<6xf32, #tpu.memory_space<smem>>
    %c1 = arith.constant 1 : index
    %1 = memref.load %arg1[%c1] : memref<6xf32, #tpu.memory_space<smem>>
    %c2 = arith.constant 2 : index
    %2 = memref.load %arg1[%c2] : memref<6xf32, #tpu.memory_space<smem>>
    %c3 = arith.constant 3 : index
    %3 = memref.load %arg1[%c3] : memref<6xf32, #tpu.memory_space<smem>>
    %c4 = arith.constant 4 : index
    %4 = memref.load %arg1[%c4] : memref<6xf32, #tpu.memory_space<smem>>
    %c5 = arith.constant 5 : index
    %5 = memref.load %arg1[%c5] : memref<6xf32, #tpu.memory_space<smem>>
    %c0_0 = arith.constant 0 : index
    %c0_1 = arith.constant 0 : index
    %6 = vector.load %arg6[%c0_0, %c0_1] : memref<32x128xf32, #tpu.memory_space<vmem>>, vector<32x128xf32>
    %c0_2 = arith.constant 0 : index
    %c0_3 = arith.constant 0 : index
    %7 = vector.load %arg7[%c0_2, %c0_3] : memref<32x128xf32, #tpu.memory_space<vmem>>, vector<32x128xf32>
    %c0_4 = arith.constant 0 : index
    %c0_5 = arith.constant 0 : index
    %8 = vector.load %arg8[%c0_4, %c0_5] : memref<32x128xi8, #tpu.memory_space<vmem>>, vector<32x128xi8>
    %9 = arith.extsi %8 : vector<32x128xi8> to vector<32x128xi32>
    %c0_i32 = arith.constant 0 : i32
    %10 = vector.broadcast %c0_i32 : i32 to vector<32x128xi32>
    %11 = arith.cmpi ne, %9, %10 : vector<32x128xi32>
    %12 = vector.broadcast %3 : f32 to vector<32x128xf32>
    %13 = arith.mulf %7, %12 : vector<32x128xf32>
    %14 = vector.broadcast %2 : f32 to vector<32x128xf32>
    %15 = arith.select %11, %14, %13 : vector<32x128xi1>, vector<32x128xf32>
    %16 = vector.broadcast %0 : f32 to vector<32x128xf32>
    %17 = arith.mulf %16, %6 : vector<32x128xf32>
    %18 = math.tan %17 : vector<32x128xf32>
    %19 = vector.broadcast %1 : f32 to vector<32x128xf32>
    %20 = arith.mulf %19, %18 : vector<32x128xf32>
    %21 = arith.mulf %20, %20 : vector<32x128xf32>
    %cst = arith.constant 1.000000e+00 : f32
    %22 = vector.broadcast %cst : f32 to vector<32x128xf32>
    %23 = arith.addf %22, %21 : vector<32x128xf32>
    %24 = math.rsqrt %23 : vector<32x128xf32>
    %25 = arith.mulf %20, %24 : vector<32x128xf32>
    %c0_6 = arith.constant 0 : index
    %c0_7 = arith.constant 0 : index
    %26 = vector.load %arg4[%c0_6, %c0_7] : memref<32x128xf32, #tpu.memory_space<vmem>>, vector<32x128xf32>
    %27 = math.cos %26 : vector<32x128xf32>
    %28 = math.sin %26 : vector<32x128xf32>
    %29 = arith.mulf %27, %24 : vector<32x128xf32>
    %30 = arith.mulf %28, %25 : vector<32x128xf32>
    %31 = arith.subf %29, %30 : vector<32x128xf32>
    %32 = arith.mulf %28, %24 : vector<32x128xf32>
    %33 = arith.mulf %27, %25 : vector<32x128xf32>
    %34 = arith.addf %32, %33 : vector<32x128xf32>
    %c0_8 = arith.constant 0 : index
    %c0_9 = arith.constant 0 : index
    %35 = vector.load %arg5[%c0_8, %c0_9] : memref<32x128xf32, #tpu.memory_space<vmem>>, vector<32x128xf32>
    %36 = vector.broadcast %4 : f32 to vector<32x128xf32>
    %37 = arith.mulf %35, %36 : vector<32x128xf32>
    %c0_10 = arith.constant 0 : index
    %c0_11 = arith.constant 0 : index
    %38 = vector.load %arg2[%c0_10, %c0_11] : memref<32x128xf32, #tpu.memory_space<vmem>>, vector<32x128xf32>
    %39 = arith.mulf %37, %31 : vector<32x128xf32>
    %40 = arith.addf %38, %39 : vector<32x128xf32>
    %c0_12 = arith.constant 0 : index
    %c0_13 = arith.constant 0 : index
    %41 = vector.load %arg9[%c0_12, %c0_13] : memref<32x128xf32, #tpu.memory_space<vmem>>, vector<32x128xf32>
    tpu.vector_store %arg9[%c0_12, %c0_13], %40 {strides = array<i32>} : memref<32x128xf32, #tpu.memory_space<vmem>>, vector<32x128xf32>,
    %c0_14 = arith.constant 0 : index
    %c0_15 = arith.constant 0 : index
    %42 = vector.load %arg3[%c0_14, %c0_15] : memref<32x128xf32, #tpu.memory_space<vmem>>, vector<32x128xf32>
    %43 = arith.mulf %37, %34 : vector<32x128xf32>
    %44 = arith.addf %42, %43 : vector<32x128xf32>
    %c0_16 = arith.constant 0 : index
    %c0_17 = arith.constant 0 : index
    %45 = vector.load %arg10[%c0_16, %c0_17] : memref<32x128xf32, #tpu.memory_space<vmem>>, vector<32x128xf32>
    tpu.vector_store %arg10[%c0_16, %c0_17], %44 {strides = array<i32>} : memref<32x128xf32, #tpu.memory_space<vmem>>, vector<32x128xf32>,
    %46 = arith.mulf %35, %25 : vector<32x128xf32>
    %47 = vector.broadcast %5 : f32 to vector<32x128xf32>
    %48 = arith.mulf %46, %47 : vector<32x128xf32>
    %49 = arith.addf %26, %48 : vector<32x128xf32>
    %c0_18 = arith.constant 0 : index
    %c0_19 = arith.constant 0 : index
    %50 = vector.load %arg11[%c0_18, %c0_19] : memref<32x128xf32, #tpu.memory_space<vmem>>, vector<32x128xf32>
    tpu.vector_store %arg11[%c0_18, %c0_19], %49 {strides = array<i32>} : memref<32x128xf32, #tpu.memory_space<vmem>>, vector<32x128xf32>,
    %51 = vector.broadcast %4 : f32 to vector<32x128xf32>
    %52 = arith.mulf %15, %51 : vector<32x128xf32>
    %53 = arith.addf %35, %52 : vector<32x128xf32>
    %cst_20 = arith.constant 0.000000e+00 : f32
    %54 = vector.broadcast %cst_20 : f32 to vector<32x128xf32>
    %55 = arith.maximumf %53, %54 : vector<32x128xf32>
    %c0_21 = arith.constant 0 : index
    %c0_22 = arith.constant 0 : index
    %56 = vector.load %arg12[%c0_21, %c0_22] : memref<32x128xf32, #tpu.memory_space<vmem>>, vector<32x128xf32>
    tpu.vector_store %arg12[%c0_21, %c0_22], %55 {strides = array<i32>} : memref<32x128xf32, #tpu.memory_space<vmem>>, vector<32x128xf32>,
    return
  }
  func.func @transform_0(%arg0: i32) -> i32 {
    %c0_i32 = arith.constant 0 : i32
    %c0_i32_0 = arith.constant 0 : i32
    return %c0_i32 : i32
  }
  func.func @transform_1(%arg0: i32) -> (i32, i32) {
    %c0_i32 = arith.constant 0 : i32
    %c0_i32_0 = arith.constant 0 : i32
    return %arg0, %c0_i32 : i32, i32
  }
  func.func @transform_2(%arg0: i32) -> (i32, i32) {
    %c0_i32 = arith.constant 0 : i32
    %c0_i32_0 = arith.constant 0 : i32
    return %arg0, %c0_i32 : i32, i32
  }
  func.func @transform_3(%arg0: i32) -> (i32, i32) {
    %c0_i32 = arith.constant 0 : i32
    %c0_i32_0 = arith.constant 0 : i32
    return %arg0, %c0_i32 : i32, i32
  }
  func.func @transform_4(%arg0: i32) -> (i32, i32) {
    %c0_i32 = arith.constant 0 : i32
    %c0_i32_0 = arith.constant 0 : i32
    return %arg0, %c0_i32 : i32, i32
  }
  func.func @transform_5(%arg0: i32) -> (i32, i32) {
    %c0_i32 = arith.constant 0 : i32
    %c0_i32_0 = arith.constant 0 : i32
    return %arg0, %c0_i32 : i32, i32
  }
  func.func @transform_6(%arg0: i32) -> (i32, i32) {
    %c0_i32 = arith.constant 0 : i32
    %c0_i32_0 = arith.constant 0 : i32
    return %arg0, %c0_i32 : i32, i32
  }
  func.func @transform_7(%arg0: i32) -> (i32, i32) {
    %c0_i32 = arith.constant 0 : i32
    %c0_i32_0 = arith.constant 0 : i32
    return %arg0, %c0_i32 : i32, i32
  }
  func.func @transform_8(%arg0: i32) -> (i32, i32) {
    %c0_i32 = arith.constant 0 : i32
    %c0_i32_0 = arith.constant 0 : i32
    return %arg0, %c0_i32 : i32, i32
  }
  func.func @transform_9(%arg0: i32) -> (i32, i32) {
    %c0_i32 = arith.constant 0 : i32
    %c0_i32_0 = arith.constant 0 : i32
    return %arg0, %c0_i32 : i32, i32
  }
  func.func @transform_10(%arg0: i32) -> (i32, i32) {
    %c0_i32 = arith.constant 0 : i32
    %c0_i32_0 = arith.constant 0 : i32
    return %arg0, %c0_i32 : i32, i32
  }
  func.func @transform_11(%arg0: i32) -> (i32, i32) {
    %c0_i32 = arith.constant 0 : i32
    %c0_i32_0 = arith.constant 0 : i32
    return %arg0, %c0_i32 : i32, i32
  }
}

</mosaic_0001>

<bundles_post_ra>
// kernel: tpu_custom_call.1
= control target key start
LH: loop header
LB: loop body
LE: loop exit
PB: predicated region body
PF: predicated region fallthrough
CT: control target
= control target key end

     0   :  { %17 = vsyncpa [#allocation5], 0  ;;  %s3301_s0 = inlined_call_operand.hbm [shape: f32[6], index: 0, kind: input, shape index: {}]   ;;  %s3302_s1 = inlined_call_operand.hbm [shape: f32[32,128], index: 1, kind: input, shape index: {}]   ;;  %s3303_s2 = inlined_call_operand.hbm [shape: f32[32,128], index: 2, kind: input, shape index: {}]   ;;  %s3304_s3 = inlined_call_operand.hbm [shape: f32[32,128], index: 3, kind: input, shape index: {}]   ;;  %s3305_s4 = inlined_call_operand.hbm [shape: f32[32,128], index: 4, kind: input, shape index: {}]   ;;  %s3306_s5 = inlined_call_operand.hbm [shape: f32[32,128], index: 5, kind: input, shape index: {}]   ;;  %s3307_s6 = inlined_call_operand.hbm [shape: f32[32,128], index: 6, kind: input, shape index: {}]   ;;  %s3308_s7 = inlined_call_operand.vmem [shape: s8[32,128], index: 7, kind: input, shape index: {}]   ;;  %s3309_s8 = inlined_call_operand.hbm [shape: f32[32,128], index: 8, kind: output, shape index: {0}]   ;;  %s3310_s9 = inlined_call_operand.hbm [shape: f32[32,128], index: 9, kind: output, shape index: {1}]   ;;  %s3311_s10 = inlined_call_operand.hbm [shape: f32[32,128], index: 10, kind: output, shape index: {2}]   ;;  %s3312_s11 = inlined_call_operand.hbm [shape: f32[32,128], index: 11, kind: output, shape index: {3}]  }
   0x1   :  { %18 = vsyncpa [#allocation3], 0 }
   0x2   :  { %19 = vsyncpa [#allocation8], 0 }
   0x3   :  { %20 = vsyncpa [#allocation11], 0 }
   0x4   :  { %21 = vsyncpa [#allocation14], 0 }
   0x5   :  { %22 = vsyncpa [#allocation4], 0 }
   0x6   :  { %23 = vsyncpa [#allocation17], 0 }
   0x7   :  { %24 = vsyncpa [#allocation20], 0  ;;  %s2048_s17 = smov [#allocation7]   ;;  %s2049_s19 = smov [#allocation10]  }
   0x8   :  { %s50_s18 = sshll.u32 %s2048_s17, 4  ;;  %s74_s20 = sshll.u32 %s2049_s19, 4  ;;  %s51_s18 = int_to_ptr.vmem [resolvable:$true] %s50_s18  ;;  %s2127_s20 = int_to_ptr.vmem [resolvable:$true] %s74_s20 }
   0x9   :  { %s1802_s23 = scalar_lea.hbm %s3303_s2, 512 }
   0xa   :  { %p1803_p0 = scmp.ne.s32.totalorder %s3303_s2, %s1802_s23  ;;  %p1806_p1 = scmp.lt.u32.totalorder %s1802_s23, %s3303_s2 }
   0xc   :  { %p1808_p2 = pnand %p1806_p1, %p1803_p0 }
   0xe   :  { %1811 = shalt.err (!%p1808_p2)
}
   0xf   :  { %s1812_s28 = scalar_lea.vmem %s51_s18, 512  ;;  %p1817_p4 = scmp.lt.s32.totalorder %s51_s18, %s51_s18 }
  0x10   :  { %p1813_p3 = scmp.ne.s32.totalorder %s51_s18, %s1812_s28  ;;  %p1818_p5 = scmp.lt.s32.totalorder %s1812_s28, %s1812_s28 }
  0x12   :  { %p1819_p6 = por %p1818_p5, %p1817_p4 }
  0x14   :  { %p1820_p7 = pnand %p1819_p6, %p1813_p3 }
  0x16   :  { %1823 = shalt.err (!%p1820_p7)
}
  0x17   :  { %s2050_s29 = smov 128   ;;  %s2051_s30 = smov 8  }
  0x18   :  { %56 = dma.hbm_to_vmem [thread:$0]  %s3303_s2, 512, %s51_s18, [#allocation8], %s2050_s29, %s2050_s29, %s2051_s30  }
  0x19   :  { %s1824_s16 = scalar_lea.hbm %s3305_s4, 512 }
  0x1a   :  { %p1825_p8 = scmp.ne.s32.totalorder %s3305_s4, %s1824_s16  ;;  %p1828_p9 = scmp.lt.u32.totalorder %s1824_s16, %s3305_s4 }
  0x1c   :  { %p1830_p10 = pnand %p1828_p9, %p1825_p8 }
  0x1e   :  { %1833 = shalt.err (!%p1830_p10)
}
  0x1f   :  { %s1834_s23 = scalar_lea.vmem %s2127_s20, 512  ;;  %p1839_p12 = scmp.lt.s32.totalorder %s2127_s20, %s2127_s20 }
  0x20   :  { %p1835_p11 = scmp.ne.s32.totalorder %s2127_s20, %s1834_s23  ;;  %p1840_p13 = scmp.lt.s32.totalorder %s1834_s23, %s1834_s23 }
  0x22   :  { %p1841_p0 = por %p1840_p13, %p1839_p12 }
  0x24   :  { %p1842_p1 = pnand %p1841_p0, %p1835_p11 }
  0x26   :  { %1845 = shalt.err (!%p1842_p1)
}
  0x27   :  { %80 = dma.hbm_to_vmem [thread:$0]  %s3305_s4, 512, %s2127_s20, [#allocation11], %s2050_s29, %s2050_s29, %s2051_s30  }
  0x28   :  { %s1846_s26 = scalar_lea.hbm %s3301_s0, 16 }
  0x29   :  { %p1847_p2 = scmp.ne.s32.totalorder %s3301_s0, %s1846_s26  ;;  %p1850_p3 = scmp.lt.u32.totalorder %s1846_s26, %s3301_s0 }
  0x2b   :  { %p1852_p4 = pnand %p1850_p3, %p1847_p2 }
  0x2d   :  { %1855 = shalt.err (!%p1852_p4)
}
  0x2e   :  { %s2052_s14 = smov [#allocation2]   ;;  %s2053_s4 = smov [#allocation6]  }
  0x2f   :  { %32 = dma.hbm_to_smem %s3301_s0, 16, %s2052_s14, [#allocation5]  }
  0x30   :  { %s38_s20 = sshll.u32 %s2053_s4, 4  ;;  %s2054_s17 = smov [#allocation9]   ;;  %s39_s20 = int_to_ptr.vmem [resolvable:$true] %s38_s20 }
  0x31   :  { %s62_s19 = sshll.u32 %s2054_s17, 4  ;;  %s1856_s23 = scalar_lea.hbm %s3302_s1, 512  ;;  %s63_s19 = int_to_ptr.vmem [resolvable:$true] %s62_s19 }
  0x32   :  { %p1857_p5 = scmp.ne.s32.totalorder %s3302_s1, %s1856_s23  ;;  %p1860_p6 = scmp.lt.u32.totalorder %s1856_s23, %s3302_s1 }
  0x34   :  { %p1862_p7 = pnand %p1860_p6, %p1857_p5 }
  0x36   :  { %1865 = shalt.err (!%p1862_p7)
}
  0x37   :  { %s1866_s0 = scalar_lea.vmem %s39_s20, 512  ;;  %p1871_p9 = scmp.lt.s32.totalorder %s39_s20, %s39_s20 }
  0x38   :  { %p1867_p8 = scmp.ne.s32.totalorder %s39_s20, %s1866_s0  ;;  %p1872_p10 = scmp.lt.s32.totalorder %s1866_s0, %s1866_s0 }
  0x3a   :  { %p1873_p11 = por %p1872_p10, %p1871_p9 }
  0x3c   :  { %p1874_p12 = pnand %p1873_p11, %p1867_p8 }
  0x3e   :  { %1877 = shalt.err (!%p1874_p12)
}
  0x3f   :  { %44 = dma.hbm_to_vmem [thread:$0]  %s3302_s1, 512, %s39_s20, [#allocation3], %s2050_s29, %s2050_s29, %s2051_s30  }
  0x40   :  { %s1878_s13 = scalar_lea.hbm %s3304_s3, 512 }
  0x41   :  { %p1879_p13 = scmp.ne.s32.totalorder %s3304_s3, %s1878_s13  ;;  %p1882_p0 = scmp.lt.u32.totalorder %s1878_s13, %s3304_s3 }
  0x43   :  { %p1884_p1 = pnand %p1882_p0, %p1879_p13 }
  0x45   :  { %1887 = shalt.err (!%p1884_p1)
}
  0x46   :  { %s1888_s17 = scalar_lea.vmem %s63_s19, 512  ;;  %p1893_p3 = scmp.lt.s32.totalorder %s63_s19, %s63_s19 }
  0x47   :  { %p1889_p2 = scmp.ne.s32.totalorder %s63_s19, %s1888_s17  ;;  %p1894_p4 = scmp.lt.s32.totalorder %s1888_s17, %s1888_s17 }
  0x49   :  { %p1895_p5 = por %p1894_p4, %p1893_p3 }
  0x4b   :  { %p1896_p6 = pnand %p1895_p5, %p1889_p2 }
  0x4d   :  { %1899 = shalt.err (!%p1896_p6)
}
  0x4e   :  { %68 = dma.hbm_to_vmem [thread:$0]  %s3304_s3, 512, %s63_s19, [#allocation8], %s2050_s29, %s2050_s29, %s2051_s30  }
  0x4f   :  { %s2055_s21 = smov [#allocation12]   ;;  %s2056_s23 = smov [#allocation13]  }
  0x50   :  { %s86_s22 = sshll.u32 %s2055_s21, 4  ;;  %s98_s2 = sshll.u32 %s2056_s23, 4  ;;  %s87_s22 = int_to_ptr.vmem [resolvable:$true] %s86_s22  ;;  %s99_s2 = int_to_ptr.vmem [resolvable:$true] %s98_s2 }
  0x51   :  { %s1900_s25 = scalar_lea.hbm %s3306_s5, 512 }
  0x52   :  { %p1901_p7 = scmp.ne.s32.totalorder %s3306_s5, %s1900_s25  ;;  %p1904_p8 = scmp.lt.u32.totalorder %s1900_s25, %s3306_s5 }
  0x54   :  { %p1906_p9 = pnand %p1904_p8, %p1901_p7 }
  0x56   :  { %1909 = shalt.err (!%p1906_p9)
}
  0x57   :  { %s1910_s3 = scalar_lea.vmem %s87_s22, 512  ;;  %p1915_p11 = scmp.lt.s32.totalorder %s87_s22, %s87_s22 }
  0x58   :  { %p1911_p10 = scmp.ne.s32.totalorder %s87_s22, %s1910_s3  ;;  %p1916_p12 = scmp.lt.s32.totalorder %s1910_s3, %s1910_s3 }
  0x5a   :  { %p1917_p13 = por %p1916_p12, %p1915_p11 }
  0x5c   :  { %p1918_p0 = pnand %p1917_p13, %p1911_p10 }
  0x5e   :  { %1921 = shalt.err (!%p1918_p0)
}
  0x5f   :  { %92 = dma.hbm_to_vmem [thread:$0]  %s3306_s5, 512, %s87_s22, [#allocation11], %s2050_s29, %s2050_s29, %s2051_s30  }
  0x60   :  { %s1922_s15 = scalar_lea.hbm %s3307_s6, 512 }
  0x61   :  { %p1923_p1 = scmp.ne.s32.totalorder %s3307_s6, %s1922_s15  ;;  %p1926_p2 = scmp.lt.u32.totalorder %s1922_s15, %s3307_s6 }
  0x63   :  { %p1928_p3 = pnand %p1926_p2, %p1923_p1 }
  0x65   :  { %1931 = shalt.err (!%p1928_p3)
}
  0x66   :  { %s1932_s20 = scalar_lea.vmem %s99_s2, 512  ;;  %p1937_p5 = scmp.lt.s32.totalorder %s99_s2, %s99_s2 }
  0x67   :  { %p1933_p4 = scmp.ne.s32.totalorder %s99_s2, %s1932_s20  ;;  %p1938_p6 = scmp.lt.s32.totalorder %s1932_s20, %s1932_s20 }
  0x69   :  { %p1939_p7 = por %p1938_p6, %p1937_p5 }
  0x6b   :  { %p1940_p8 = pnand %p1939_p7, %p1933_p4 }
  0x6d   :  { %1943 = shalt.err (!%p1940_p8)
}
  0x6e   :  { %104 = dma.hbm_to_vmem [thread:$0]  %s3307_s6, 512, %s99_s2, [#allocation14], %s2050_s29, %s2050_s29, %s2051_s30  }
  0x6f   :  { %2032 = dma.done.wait [#allocation5], 16  }
  0x70   :  { %2033 = vsyncadd [#allocation5], 4294967280 }
  0x71   :  { %2034 = dma.done.wait [#allocation3], 512  }
  0x72   :  { %2035 = vsyncadd [#allocation3], 4294966784 }
  0x73   :  { %2036 = dma.done.wait [#allocation8], 1024  }
  0x74   :  { %2037 = vsyncadd [#allocation8], 4294966272 }
  0x75   :  { %2038 = dma.done.wait [#allocation11], 1024  }
  0x76   :  { %2039 = vsyncadd [#allocation11], 4294966272 }
  0x77   :  { %2040 = dma.done.wait [#allocation14], 512  }
  0x78   :  { %2041 = vsyncadd [#allocation14], 4294966784 }
  0x79   :  { %128 = sfence }
  0x7a   :  { %s129_s22 = sld [smem:[#allocation2]]  ;;  %v2236_v0 = vld [vmem:[#allocation9] sm:$0xff]  ;;  %v136_v5 = vld [vmem:[#allocation12 + $0x8] sm:$0xff]  ;;  %v2057_v27 = vmov 683565275   ;;  %s2394_s6 = sld [smem:[#allocation2 + $0x4]] }
  0x7b   :  { %v652_v1 = vand.u32 2147483647, %v2236_v0  ;;  %v655_v2 = vand.u32 2139095040, %v2236_v0  ;;  %v135_v3 = vld [vmem:[#allocation12] sm:$0xff]  ;;  %v2058_v29 = vmov 2475754826  }
  0x7c   :  { %v2059_v32 = vmov 2131351028   ;;  %v2060_v38 = vmov 2102212464   ;;  %v2061_v43 = vmov 920167782  }
  0x7d   :  { %v656_v4 = vshrl.u32 %v655_v2, 23  ;;  %v659_v9 = vand.u32 8388607, %v652_v1  ;;  %v2062_v55 = vmov 1326507024   ;;  %s2418_s23 = sld [smem:[#allocation2 + $0x1]] }
  0x7e   :  { %s3034_s2 = sld [smem:[#allocation2 + $0x5]]  ;;  %s3097_s18 = sld [smem:[#allocation2 + $0x3]] }
  0x7f   :  { %v1667_v8 = vadd.s32 4294967169, %v656_v4  ;;  %v660_v16 = vor.u32 8388608, %v659_v9  ;;  %s3100_s24 = sld [smem:[#allocation2 + $0x2]] }
  0x80   :  { %v2240_v6 = vstv %s129_s22 }
  0x81   :  { %v2243_v7 = vmul.f32 %v2240_v6, %v135_v3  ;;  %v2248_v10 = vmul.f32 %v2240_v6, %v136_v5  ;;  %v662_v13 = vadd.s32 1, %v1667_v8  ;;  %v2255_v24 = vshll.u32 %v660_v16, 8 }
  0x83   :  { %v167_v11 = vand.u32 2147483647, %v2243_v7  ;;  %v170_v12 = vand.u32 2139095040, %v2243_v7  ;;  %v285_v17 = vand.u32 2139095040, %v2248_v10  ;;  %vm663_vm0 = vcmp.gt.s32.totalorder %v662_v13, 0 }
  0x84   :  { %v664_v20 = vsel %vm663_vm0, %v662_v13, 0  ;;  %vm169_vm15 = vcmp.lt.s32.totalorder %v2243_v7, 0 }
  0x85   :  { %v171_v14 = vshrl.u32 %v170_v12, 23  ;;  %v174_v15 = vand.u32 8388607, %v167_v11  ;;  %v286_v21 = vshrl.u32 %v285_v17, 23  ;;  %v666_v22 = vand.u32 31, %v664_v20 }
  0x86   :  { %v2257_v25 = vshrl.u32 %v664_v20, 5 }
  0x87   :  { %v1651_v18 = vadd.s32 4294967169, %v171_v14  ;;  %v175_v19 = vor.u32 8388608, %v174_v15  ;;  %v667_v26 = vsub.s32 32, %v666_v22  ;;  %v669_v28 = vshll.u32 %v2057_v27, %v666_v22 }
  0x88   :  { %v672_v30 = vshll.u32 %v2058_v29, %v666_v22  ;;  %v675_v33 = vshll.u32 %v2059_v32, %v666_v22  ;;  %v2264_v34 = vadd.s32 4294967169, %v286_v21  ;;  %v678_v39 = vshll.u32 %v2060_v38, %v666_v22 }
  0x89   :  { %v177_v23 = vadd.s32 1, %v1651_v18  ;;  %v2261_v31 = vshll.u32 %v175_v19, 8  ;;  %v670_v36 = vshrl.u32 %v2058_v29, %v667_v26  ;;  %v673_v37 = vshrl.u32 %v2059_v32, %v667_v26 }
  0x8a   :  { %v668_v42 = vshrl.u32 %v2057_v27, %v667_v26  ;;  %v681_v44 = vshll.u32 %v2061_v43, %v666_v22  ;;  %v676_v47 = vshrl.u32 %v2060_v38, %v667_v26  ;;  %v679_v48 = vshrl.u32 %v2061_v43, %v667_v26 }
  0x8b   :  { %vm178_vm1 = vcmp.gt.s32.totalorder %v177_v23, 0  ;;  %v671_v45 = vor.u32 %v670_v36, %v669_v28  ;;  %v674_v46 = vor.u32 %v673_v37, %v672_v30  ;;  %vm684_vm2 = vcmp.lt.s32.totalorder %v2257_v25, 1 }
  0x8c   :  { %v179_v35 = vsel %vm178_vm1, %v177_v23, 0  ;;  %v682_v56 = vshrl.u32 %v2062_v55, %v667_v26  ;;  %vm685_vm4 = vcmp.lt.s32.totalorder %v2257_v25, 2  ;;  %v677_v8 = vor.u32 %v676_v47, %v675_v33 }
  0x8d   :  { %v180_v40 = vshrl.u32 %v179_v35, 5  ;;  %v181_v41 = vand.u32 31, %v179_v35  ;;  %v680_v9 = vor.u32 %v679_v48, %v678_v39  ;;  %vm686_vm8 = vcmp.lt.s32.totalorder %v2257_v25, 3 }
  0x8e   :  { %v683_v19 = vor.u32 %v682_v56, %v681_v44  ;;  %vm687_vm9 = vcmp.lt.s32.totalorder %v2257_v25, 4  ;;  %v688_v28 = vsel %vm684_vm2, %v668_v42, %v671_v45  ;;  %v692_v39 = vsel %vm684_vm2, %v671_v45, %v674_v46 }
  0x8f   :  { %v182_v49 = vsub.s32 32, %v181_v41  ;;  %v184_v50 = vshll.u32 %v2057_v27, %v181_v41  ;;  %v187_v51 = vshll.u32 %v2058_v29, %v181_v41  ;;  %v190_v52 = vshll.u32 %v2059_v32, %v181_v41 }
  0x90   :  { %v193_v53 = vshll.u32 %v2060_v38, %v181_v41  ;;  %v196_v54 = vshll.u32 %v2061_v43, %v181_v41  ;;  %vm199_vm3 = vcmp.lt.s32.totalorder %v180_v40, 1  ;;  %vm200_vm5 = vcmp.lt.s32.totalorder %v180_v40, 2 }
  0x91   :  { %v183_v57 = vshrl.u32 %v2057_v27, %v182_v49  ;;  %v185_v58 = vshrl.u32 %v2058_v29, %v182_v49  ;;  %v188_v59 = vshrl.u32 %v2059_v32, %v182_v49  ;;  %v191_v60 = vshrl.u32 %v2060_v38, %v182_v49 }
  0x92   :  { %v194_v61 = vshrl.u32 %v2061_v43, %v182_v49  ;;  %v197_v62 = vshrl.u32 %v2062_v55, %v182_v49  ;;  %vm201_vm6 = vcmp.lt.s32.totalorder %v180_v40, 3  ;;  %vm202_vm7 = vcmp.lt.s32.totalorder %v180_v40, 4 }
  0x93   :  { %v186_v63 = vor.u32 %v185_v58, %v184_v50  ;;  %v189_v2 = vor.u32 %v188_v59, %v187_v51  ;;  %v192_v3 = vor.u32 %v191_v60, %v190_v52  ;;  %v689_v37 = vsel %vm687_vm9, %v677_v8, 2102212464  ;;  %v2340_v59 = vld [vmem:[#allocation9 + $0x8] sm:$0xff] }
  0x94   :  { %v195_v4 = vor.u32 %v194_v61, %v193_v53  ;;  %v198_v5 = vor.u32 %v197_v62, %v196_v54  ;;  %v693_v41 = vsel %vm687_vm9, %v680_v9, 920167782  ;;  %v696_v40 = vsel %vm684_vm2, %v674_v46, %v677_v8 }
  0x95   :  { %v203_v12 = vsel %vm199_vm3, %v183_v57, %v186_v63  ;;  %v204_v13 = vsel %vm202_vm7, %v192_v3, 2102212464  ;;  %v207_v14 = vsel %vm199_vm3, %v186_v63, %v189_v2  ;;  %v211_v15 = vsel %vm199_vm3, %v189_v2, %v192_v3 }
  0x96   :  { %v205_v16 = vsel %vm201_vm6, %v189_v2, %v204_v13  ;;  %v208_v17 = vsel %vm202_vm7, %v195_v4, 920167782  ;;  %v212_v18 = vsel %vm202_vm7, %v198_v5, 1326507024  ;;  %v690_v42 = vsel %vm686_vm8, %v674_v46, %v689_v37 }
  0x97   :  { %v209_v20 = vsel %vm201_vm6, %v192_v3, %v208_v17  ;;  %v213_v21 = vsel %vm201_vm6, %v195_v4, %v212_v18  ;;  %v206_v22 = vsel %vm200_vm5, %v203_v12, %v205_v16  ;;  %v694_v44 = vsel %vm686_vm8, %v677_v8, %v693_v41 }
  0x98   :  { %v210_v23 = vsel %vm200_vm5, %v207_v14, %v209_v20  ;;  %v214_v26 = vsel %vm200_vm5, %v211_v15, %v213_v21  ;;  %v697_v47 = vsel %vm687_vm9, %v683_v19, 1326507024  ;;  %v292_v48 = vadd.s32 1, %v2264_v34 }
  0x99   :  { %v2301_v30 = vmul.u32.u64.low %v2261_v31, %v214_v26  ;;  %v2302_v33 = vmul.u32.u64.high %v2261_v31, %v214_v26, %v2301_v30  ;;  %v2305_v35 = vmul.u32.u64.low %v2261_v31, %v210_v23  ;;  %v2306_v36 = vmul.u32.u64.high %v2261_v31, %v210_v23, %v2305_v35 }
  0x9a   :  { %v222_v49 = vmul.u32 %v2261_v31, %v206_v22  ;;  %v695_v50 = vsel %vm685_vm4, %v692_v39, %v694_v44  ;;  %v698_v45 = vsel %vm686_vm8, %v680_v9, %v697_v47  ;;  %v691_v46 = vsel %vm685_vm4, %v688_v28, %v690_v42 }
  0x9b   :  { %vm224_vm10 = vc.u32 %v2302_v33, %v2305_v35  ;;  %v225_v51 = vadd.s32 1, %v2306_v36  ;;  %v699_v52 = vsel %vm685_vm4, %v696_v40, %v698_v45  ;;  %vm293_vm11 = vcmp.gt.s32.totalorder %v292_v48, 0 }
  0x9c   :  { %v2331_v34 = vmul.u32.u64.low %v2255_v24, %v699_v52  ;;  %v2332_v31 = vmul.u32.u64.high %v2255_v24, %v699_v52, %v2331_v34  ;;  %v2335_v53 = vmul.u32.u64.low %v2255_v24, %v695_v50  ;;  %v2336_v54 = vmul.u32.u64.high %v2255_v24, %v695_v50, %v2335_v53 }
  0x9d   :  { %v226_v56 = vsel %vm224_vm10, %v225_v51, %v2306_v36  ;;  %v294_v58 = vsel %vm293_vm11, %v292_v48, 0  ;;  %v707_v60 = vmul.u32 %v2255_v24, %v691_v46  ;;  %v282_v63 = vand.u32 2147483647, %v2248_v10 }
  0x9e   :  { %v227_v57 = vadd.s32 %v226_v56, %v222_v49  ;;  %v296_v25 = vand.u32 31, %v294_v58  ;;  %vm709_vm12 = vc.u32 %v2332_v31, %v2335_v53  ;;  %v710_v62 = vadd.s32 1, %v2336_v54 }
  0x9f   :  { %v758_v2 = vand.u32 2139095040, %v2340_v59  ;;  %v289_v24 = vand.u32 8388607, %v282_v63  ;;  %v295_v23 = vshrl.u32 %v294_v58, 5  ;;  %v755_v37 = vand.u32 2147483647, %v2340_v59 }
  0xa0   :  { %v228_v61 = vadd.s32 536870912, %v227_v57  ;;  %v711_v4 = vsel %vm709_vm12, %v710_v62, %v2336_v54  ;;  %v297_v5 = vsub.s32 32, %v296_v25  ;;  %v299_v15 = vshll.u32 %v2057_v27, %v296_v25 }
  0xa1   :  { %v712_v8 = vadd.s32 %v711_v4, %v707_v60  ;;  %v759_v13 = vshrl.u32 %v758_v2, 23  ;;  %v302_v17 = vshll.u32 %v2058_v29, %v296_v25  ;;  %v308_v20 = vshll.u32 %v2060_v38, %v296_v25 }
  0xa2   :  { %v229_v3 = vshrl.u32 %v228_v61, 30  ;;  %v300_v16 = vshrl.u32 %v2058_v29, %v297_v5  ;;  %v303_v19 = vshrl.u32 %v2059_v32, %v297_v5  ;;  %v309_v21 = vshrl.u32 %v2061_v43, %v297_v5 }
  0xa3   :  { %v713_v12 = vadd.s32 536870912, %v712_v8  ;;  %v305_v26 = vshll.u32 %v2059_v32, %v296_v25  ;;  %v306_v28 = vshrl.u32 %v2060_v38, %v297_v5  ;;  %v290_v36 = vor.u32 8388608, %v289_v24 }
  0xa4   :  { %v230_v9 = vshll.u32 %v229_v3, 30  ;;  %v1671_v39 = vadd.s32 4294967169, %v759_v13  ;;  %v298_v40 = vshrl.u32 %v2057_v27, %v297_v5  ;;  %v301_v42 = vor.u32 %v300_v16, %v299_v15 }
  0xa5   :  { %v2356_v18 = vshrl.u32 %v713_v12, 30  ;;  %v311_v44 = vshll.u32 %v2061_v43, %v296_v25  ;;  %v304_v48 = vor.u32 %v303_v19, %v302_v17  ;;  %v310_v49 = vor.u32 %v309_v21, %v308_v20 }
  0xa6   :  { %v2351_v14 = vsub.s32 %v227_v57, %v230_v9  ;;  %v312_v50 = vshrl.u32 %v2062_v55, %v297_v5  ;;  %v307_v51 = vor.u32 %v306_v28, %v305_v26  ;;  %vm314_vm13 = vcmp.lt.s32.totalorder %v295_v23, 1 }
  0xa7   :  { %v715_v30 = vshll.u32 %v2356_v18, 30  ;;  %vm317_vm14 = vcmp.lt.s32.totalorder %v295_v23, 4  ;;  %v223_v46 = vadd.s32 %v2305_v35, %v2302_v33  ;;  %v2376_v34 = vshll.u32 %v290_v36, 8 }
  0xa8   :  { %v233_v22 = vsub.s32 0, %v2351_v14  ;;  %v253_v56 = vsub.s32 4, %v229_v3  ;;  %vm316_vm0 = vcmp.lt.s32.totalorder %v295_v23, 3  ;;  %v319_v57 = vsel %vm317_vm14, %v307_v51, 2102212464 }
  0xa9   :  { %v2369_v47 = vsub.s32 %v712_v8, %v715_v30  ;;  %vm315_vm1 = vcmp.lt.s32.totalorder %v295_v23, 2  ;;  %v322_v60 = vsel %vm314_vm13, %v301_v42, %v304_v48  ;;  %v323_v25 = vsel %vm317_vm14, %v310_v49, 920167782 }
  0xaa   :  { %v1652_v41 = vmin.u32 %v233_v22, %v2351_v14  ;;  %v313_v61 = vor.u32 %v312_v50, %v311_v44  ;;  %v318_v33 = vsel %vm314_vm13, %v298_v40, %v301_v42  ;;  %v765_v35 = vadd.s32 1, %v1671_v39 }
  0xab   :  { %v718_v52 = vsub.s32 0, %v2369_v47  ;;  %v320_v4 = vsel %vm316_vm0, %v304_v48, %v319_v57  ;;  %v324_v5 = vsel %vm316_vm0, %v307_v51, %v323_v25  ;;  %v254_v13 = vsel %vm169_vm15, %v253_v56, %v229_v3 }
  0xac   :  { %v235_v45 = vclz %v1652_v41  ;;  %v325_v24 = vsel %vm315_vm1, %v322_v60, %v324_v5  ;;  %v708_v15 = vadd.s32 %v2335_v53, %v2332_v31  ;;  %v326_v17 = vsel %vm314_vm13, %v304_v48, %v307_v51 }
  0xad   :  { %v1668_v58 = vmin.u32 %v718_v52, %v2369_v47  ;;  %v321_v21 = vsel %vm315_vm1, %v318_v33, %v320_v4  ;;  %v327_v22 = vsel %vm317_vm14, %v313_v61, 1326507024  ;;  %vm766_vm4 = vcmp.gt.s32.totalorder %v765_v35, 0 }
  0xae   :  { %v1653_v54 = vadd.s32 4294967294, %v235_v45  ;;  %v2398_v26 = vmul.u32.u64.low %v2376_v34, %v325_v24  ;;  %v2399_v3 = vmul.u32.u64.high %v2376_v34, %v325_v24, %v2398_v26  ;;  %v767_v51 = vsel %vm766_vm4, %v765_v35, 0 }
  0xaf   :  { %v720_v2 = vclz %v1668_v58  ;;  %vm2411_vm5 = vcmp.le.f32.partialorder %v167_v11, 0.7853982  ;;  %v769_v52 = vand.u32 31, %v767_v51  ;;  %vm654_vm6 = vcmp.lt.s32.totalorder %v2236_v0, 0 }
  0xb0   :  { %vm1654_vm2 = vcmp.lt.s32.totalorder %v1653_v54, 0  ;;  %v340_v45 = vadd.s32 1, %v2399_v3  ;;  %vm2425_vm8 = vcmp.le.f32.partialorder %v652_v1, 0.7853982  ;;  %v2430_v61 = vstv %s2394_s6 }
  0xb1   :  { %v238_v62 = vsel %vm1654_vm2, 0, %v1653_v54  ;;  %v1669_v16 = vadd.s32 4294967294, %v720_v2  ;;  %v256_v54 = vsel %vm2411_vm5, 0, %v254_v13  ;;  %v770_v11 = vsub.s32 32, %v769_v52 }
  0xb2   :  { %v239_v8 = vsub.s32 32, %v238_v62  ;;  %v240_v9 = vshll.u32 %v2351_v14, %v238_v62  ;;  %v243_v12 = vsub.s32 4294967266, %v238_v62  ;;  %v328_v14 = vsel %vm316_vm0, %v310_v49, %v327_v22 }
  0xb3   :  { %vm1670_vm3 = vcmp.lt.s32.totalorder %v1669_v16, 0  ;;  %v329_v30 = vsel %vm315_vm1, %v326_v17, %v328_v14  ;;  %v2433_v62 = vand.u32 3, %v256_v54  ;;  %v762_v4 = vand.u32 8388607, %v755_v37 }
  0xb4   :  { %v241_v19 = vshrl.u32 %v223_v46, %v239_v8  ;;  %v244_v20 = vadd.s32 127, %v243_v12  ;;  %v723_v28 = vsel %vm1670_vm3, 0, %v1669_v16  ;;  %v337_v46 = vmul.u32 %v2376_v34, %v321_v21 }
  0xb5   :  { %v724_v36 = vsub.s32 32, %v723_v28  ;;  %v725_v39 = vshll.u32 %v2369_v47, %v723_v28  ;;  %v728_v41 = vsub.s32 4294967266, %v723_v28  ;;  %v261_v5 = vadd.s32 3, %v256_v54 }
  0xb6   :  { %v242_v31 = vor.u32 %v241_v19, %v240_v9  ;;  %v245_v53 = vshll.u32 %v244_v20, 23  ;;  %v2405_v44 = vmul.u32.u64.low %v2376_v34, %v329_v30  ;;  %v2406_v48 = vmul.u32.u64.high %v2376_v34, %v329_v30, %v2405_v44  ;;  %v1504_v19 = vld [vmem:[#allocation10] sm:$0xff] }
  0xb7   :  { %v726_v49 = vshrl.u32 %v708_v15, %v724_v36  ;;  %v729_v50 = vadd.s32 127, %v728_v41  ;;  %v738_v1 = vsub.s32 4, %v2356_v18  ;;  %v2438_v9 = vshrl.u32 %v767_v51, 5 }
  0xb8   :  { %v246_v40 = vor.u32 4788187, %v245_v53  ;;  %v249_v42 = vcvt.s32.f32 %v242_v31  ;;  %vm339_vm7 = vc.u32 %v2406_v48, %v2398_v26  ;;  %v775_v13 = vshll.u32 %v2058_v29, %v769_v52 }
  0xb9   :  { %v727_v56 = vor.u32 %v726_v49, %v725_v39  ;;  %v730_v57 = vshll.u32 %v729_v50, 23  ;;  %v341_v33 = vsel %vm339_vm7, %v340_v45, %v2399_v3  ;;  %v776_v15 = vshrl.u32 %v2059_v32, %v770_v11 }
  0xba   :  { %v247_v47 = vand.u32 2147483647, %v246_v40  ;;  %v342_v2 = vadd.s32 %v341_v33, %v337_v46  ;;  %v778_v20 = vshll.u32 %v2059_v32, %v769_v52  ;;  %v779_v21 = vshrl.u32 %v2060_v38, %v770_v11 }
  0xbb   :  { %v731_v34 = vor.u32 4788187, %v730_v57  ;;  %v734_v25 = vcvt.s32.f32 %v727_v56  ;;  %v781_v14 = vshll.u32 %v2060_v38, %v769_v52  ;;  %v782_v3 = vshrl.u32 %v2061_v43, %v770_v11 }
  0xbc   :  { %v250_v58 = vmul.f32 %v249_v42, %v247_v47  ;;  %v343_v24 = vadd.s32 536870912, %v342_v2  ;;  %v784_v53 = vshll.u32 %v2061_v43, %v769_v52  ;;  %v785_v28 = vshrl.u32 %v2062_v55, %v770_v11 }
  0xbd   :  { %v732_v8 = vand.u32 2147483647, %v731_v34  ;;  %v2456_v30 = vstv %s2418_s23  ;;  %v2459_v36 = vmul.f32 %v2430_v61, %v1504_v19  ;;  %v763_v41 = vor.u32 8388608, %v762_v4 }
  0xbe   :  { %v251_v35 = vxor.u32 2147483648, %v250_v58  ;;  %v2449_v22 = vshrl.u32 %v343_v24, 30  ;;  %v2462_v40 = vand.u32 3, %v261_v5  ;;  %v772_v44 = vshll.u32 %v2057_v27, %v769_v52 }
  0xbf   :  { %v735_v17 = vmul.f32 %v734_v25, %v732_v8  ;;  %v773_v49 = vshrl.u32 %v2058_v29, %v770_v11  ;;  %vm263_vm9 = vcmp.lt.s32.totalorder %v2433_v62, 2  ;;  %v739_v50 = vsel %vm654_vm6, %v738_v1, %v2356_v18 }
  0xc0   :  { %v252_v12 = vsel %vm169_vm15, %v251_v35, %v250_v58  ;;  %v345_v39 = vshll.u32 %v2449_v22, 30  ;;  %v783_v51 = vor.u32 %v782_v3, %v781_v14  ;;  %v777_v23 = vor.u32 %v776_v15, %v775_v13  ;;  %v137_v58 = vld [vmem:[#allocation12 + $0x10] sm:$0xff] }
  0xc1   :  { %v255_v16 = vsel %vm2411_vm5, %v2243_v7, %v252_v12  ;;  %v736_v31 = vxor.u32 2147483648, %v735_v17  ;;  %v780_v47 = vor.u32 %v779_v21, %v778_v20  ;;  %v786_v46 = vor.u32 %v785_v28, %v784_v53 }
  0xc2   :  { %1750 = vcosq.f32 %v255_v16  ;;  %v2472_v45 = vsub.s32 %v342_v2, %v345_v39  ;;  %vm790_vm10 = vcmp.lt.s32.totalorder %v2438_v9, 4  ;;  %vm264_vm11 = vcmp.eq.s32.totalorder %v2433_v62, 0 }
  0xc3   :  { %1752 = vsinq.f32 %v255_v16  ;;  %v737_v42 = vsel %vm654_vm6, %v736_v31, %v735_v17  ;;  %vm787_vm12 = vcmp.lt.s32.totalorder %v2438_v9, 1  ;;  %vm267_vm13 = vcmp.eq.s32.totalorder %v2433_v62, 2 }
  0xc4   :  { %v740_v52 = vsel %vm2425_vm8, %v2236_v0, %v737_v42  ;;  %v348_v54 = vsub.s32 0, %v2472_v45  ;;  %v741_v18 = vsel %vm2425_vm8, 0, %v739_v50  ;;  %v774_v56 = vor.u32 %v773_v49, %v772_v44 }
  0xc5   :  { %v2484_v57 = vshll.u32 %v763_v41, 8  ;;  %v771_v25 = vshrl.u32 %v2057_v27, %v770_v11  ;;  %vm789_vm14 = vcmp.lt.s32.totalorder %v2438_v9, 3  ;;  %v796_v33 = vsel %vm790_vm10, %v783_v51, 920167782 }
  0xc6   :  { %v1656_v34 = vmin.u32 %v348_v54, %v2472_v45  ;;  %1754 = vcosq.f32 %v740_v52  ;;  %vm788_vm15 = vcmp.lt.s32.totalorder %v2438_v9, 2  ;;  %v799_v60 = vsel %vm787_vm12, %v777_v23, %v780_v47 }
  0xc7   :  { %v800_v35 = vsel %vm790_vm10, %v786_v46, 1326507024  ;;  %1756 = vsinq.f32 %v740_v52  ;;  %v792_v11 = vsel %vm790_vm10, %v780_v47, 2102212464  ;;  %v2499_v5 = vmul.f32 %v2240_v6, %v137_v58 }
  0xc8   :  { %v350_v4 = vclz %v1656_v34  ;;  %v795_v12 = vsel %vm787_vm12, %v774_v56, %v777_v23  ;;  %v797_v24 = vsel %vm789_vm14, %v780_v47, %v796_v33  ;;  %v801_v13 = vsel %vm789_vm14, %v783_v51, %v800_v35 }
  0xc9   :  { %v338_v16 = vadd.s32 %v2398_v26, %v2406_v48  ;;  %v802_v19 = vsel %vm788_vm15, %v799_v60, %v801_v13  ;;  %vm284_vm0 = vcmp.lt.s32.totalorder %v2248_v10, 0  ;;  %v791_v21 = vsel %vm787_vm12, %v771_v25, %v774_v56  ;;  %v2571_v13 = vld [vmem:[#allocation9 + $0x10] sm:$0xff] }
  0xca   :  { %v1657_v17 = vadd.s32 4294967294, %v350_v4  ;;  %v2517_v14 = vmul.u32.u64.low %v2484_v57, %v802_v19  ;;  %v2518_v3 = vmul.u32.u64.high %v2484_v57, %v802_v19, %v2517_v14  ;;  %v793_v26 = vsel %vm789_vm14, %v777_v23, %v792_v11 }
  0xcb   :  { %v798_v48 = vsel %vm788_vm15, %v795_v12, %v797_v24  ;;  %vm272_vm2 = vcmp.eq.s32.totalorder %v2462_v40, 0  ;;  %v2529_v28 = vand.u32 3, %v741_v18  ;;  %v1157_v41 = vadd.s32 3, %v741_v18 }
  0xcc   :  { %v1751_v2 = vpop.eup %1750  ;;  %vm1658_vm1 = vcmp.lt.s32.totalorder %v1657_v17, 0  ;;  %vm2533_vm3 = vcmp.le.f32.partialorder %v282_v63, 0.7853982  ;;  %v794_v62 = vsel %vm788_vm15, %v791_v21, %v793_v26  ;;  %vm259_vm4 = vweird.f32 %v2243_v7 }
  0xcd   :  { %v1753_v8 = vpop.eup %1752  ;;  %v268_v1 = vxor.u32 2147483648, %v1751_v2  ;;  %v353_v39 = vsel %vm1658_vm1, 0, %v1657_v17  ;;  %v2541_v51 = vmul.u32.u64.low %v2484_v57, %v798_v48  ;;  %v2542_v23 = vmul.u32.u64.high %v2484_v57, %v798_v48, %v2541_v51 }
  0xce   :  { %v265_v15 = vxor.u32 2147483648, %v1753_v8  ;;  %v354_v44 = vsub.s32 32, %v353_v39  ;;  %v355_v49 = vshll.u32 %v2472_v45, %v353_v39  ;;  %v358_v50 = vsub.s32 4294967266, %v353_v39 }
  0xcf   :  { %v269_v20 = vsel %vm267_vm13, %v268_v1, %v1753_v8  ;;  %vm275_vm5 = vcmp.eq.s32.totalorder %v2462_v40, 2  ;;  %v368_v47 = vsub.s32 4, %v2449_v22  ;;  %v400_v46 = vand.u32 2139095040, %v2499_v5 }
  0xd0   :  { %v266_v31 = vsel %vm264_vm11, %v1751_v2, %v265_v15  ;;  %v356_v63 = vshrl.u32 %v338_v16, %v354_v44  ;;  %v1755_v52 = vpop.eup %1754  ;;  %vm271_vm6 = vcmp.lt.s32.totalorder %v2462_v40, 2  ;;  %vm746_vm7 = vcmp.lt.s32.totalorder %v2529_v28, 2 }
  0xd1   :  { %v270_v53 = vsel %vm263_vm9, %v266_v31, %v269_v20  ;;  %vm747_vm8 = vcmp.eq.s32.totalorder %v2529_v28, 0  ;;  %v359_v9 = vadd.s32 127, %v358_v50  ;;  %v1757_v45 = vpop.eup %1756  ;;  %v2552_v54 = vand.u32 3, %v1157_v41 }
  0xd2   :  { %1758 = vrcp.f32 %v270_v53  ;;  %v357_v18 = vor.u32 %v356_v63, %v355_v49  ;;  %v810_v56 = vmul.u32 %v2484_v57, %v794_v62  ;;  %vm812_vm9 = vc.u32 %v2518_v3, %v2541_v51 }
  0xd3   :  { %v274_v58 = vsel %vm272_vm2, %v1751_v2, %v265_v15  ;;  %v277_v34 = vsel %vm275_vm5, %v268_v1, %v1753_v8  ;;  %v360_v25 = vshll.u32 %v359_v9, 23  ;;  %v813_v33 = vadd.s32 1, %v2542_v23 }
  0xd4   :  { %vm750_vm10 = vcmp.eq.s32.totalorder %v2529_v28, 2  ;;  %v751_v60 = vxor.u32 2147483648, %v1755_v52  ;;  %v369_v35 = vsel %vm284_vm0, %v368_v47, %v2449_v22  ;;  %v401_v57 = vshrl.u32 %v400_v46, 23 }
  0xd5   :  { %v748_v4 = vxor.u32 2147483648, %v1757_v45  ;;  %v361_v11 = vor.u32 4788187, %v360_v25  ;;  %v364_v12 = vcvt.s32.f32 %v357_v18  ;;  %v814_v24 = vsel %vm812_vm9, %v813_v33, %v2542_v23 }
  0xd6   :  { %v278_v2 = vsel %vm271_vm6, %v274_v58, %v277_v34  ;;  %vm744_vm11 = vweird.f32 %v2236_v0  ;;  %vm1159_vm12 = vcmp.lt.s32.totalorder %v2552_v54, 2  ;;  %v815_v8 = vadd.s32 %v814_v24, %v810_v56 }
  0xd7   :  { %v1659_v1 = vadd.s32 4294967169, %v401_v57  ;;  %vm1160_vm13 = vcmp.eq.s32.totalorder %v2552_v54, 0  ;;  %vm1163_vm14 = vcmp.eq.s32.totalorder %v2552_v54, 2  ;;  %v362_v22 = vand.u32 2147483647, %v361_v11 }
  0xd8   :  { %v371_v15 = vsel %vm2533_vm3, 0, %v369_v35  ;;  %v752_v40 = vsel %vm750_vm10, %v751_v60, %v1757_v45  ;;  %v816_v17 = vadd.s32 536870912, %v815_v8  ;;  %v397_v19 = vand.u32 2147483647, %v2499_v5 }
  0xd9   :  { %v407_v20 = vadd.s32 1, %v1659_v1  ;;  %v749_v14 = vsel %vm747_vm8, %v1755_v52, %v748_v4  ;;  %v365_v31 = vmul.f32 %v364_v12, %v362_v22  ;;  %vm757_vm15 = vcmp.lt.s32.totalorder %v2340_v59, 0 }
  0xda   :  { %v861_v26 = vand.u32 2139095040, %v2571_v13  ;;  %v2584_v48 = vand.u32 3, %v371_v15  ;;  %v376_v53 = vadd.s32 3, %v371_v15  ;;  %v817_v39 = vshrl.u32 %v816_v17, 30 }
  0xdb   :  { %vm408_vm1 = vcmp.gt.s32.totalorder %v407_v20, 0  ;;  %v1165_v44 = vsel %vm1163_vm14, %v751_v60, %v1757_v45  ;;  %v366_v49 = vxor.u32 2147483648, %v365_v31  ;;  %v753_v23 = vsel %vm746_vm7, %v749_v14, %v752_v40 }
  0xdc   :  { %v1759_v16 = vpop.eup %1758  ;;  %v409_v50 = vsel %vm408_vm1, %v407_v20, 0  ;;  %v1162_v63 = vsel %vm1160_vm13, %v1755_v52, %v748_v4  ;;  %v818_v47 = vshll.u32 %v817_v39, 30  ;;  %vm2601_vm2 = vcmp.le.f32.partialorder %v755_v37, 0.7853982 }
  0xdd   :  { %v280_v21 = vmul.f32 %v1759_v16, %v278_v2  ;;  %v367_v46 = vsel %vm284_vm0, %v366_v49, %v365_v31  ;;  %v404_v9 = vand.u32 8388607, %v397_v19  ;;  %v411_v45 = vand.u32 31, %v409_v50 }
  0xde   :  { %v862_v18 = vshrl.u32 %v861_v26, 23  ;;  %v370_v52 = vsel %vm2533_vm3, %v2248_v10, %v367_v46  ;;  %v2612_v56 = vsub.s32 %v815_v8, %v818_v47  ;;  %v841_v58 = vsub.s32 4, %v817_v39 }
  0xdf   :  { %v281_v41 = vsel %vm259_vm4, nan, %v280_v21  ;;  %1760 = vcosq.f32 %v370_v52  ;;  %v2614_v37 = vand.u32 3, %v376_v53  ;;  %v412_v34 = vsub.s32 32, %v411_v45 }
  0xe0   :  { %v2591_v62 = vmul.f32 %v2456_v30, %v281_v41  ;;  %v858_v25 = vand.u32 2147483647, %v2571_v13  ;;  %1762 = vsinq.f32 %v370_v52  ;;  %v811_v60 = vadd.s32 %v2541_v51, %v2518_v3 }
  0xe1   :  { %v821_v35 = vsub.s32 0, %v2612_v56  ;;  %v2622_v42 = vsel %vm744_vm11, nan, %v753_v23  ;;  %v1166_v57 = vsel %vm1159_vm12, %v1162_v63, %v1165_v44  ;;  %vm382_vm0 = vcmp.eq.s32.totalorder %v2584_v48, 2 }
  0xe2   :  { %v632_v28 = vmul.f32 %v2591_v62, %v2591_v62  ;;  %v405_v4 = vor.u32 8388608, %v404_v9  ;;  %v1675_v11 = vadd.s32 4294967169, %v862_v18  ;;  %vm379_vm3 = vcmp.eq.s32.totalorder %v2584_v48, 0 }
  0xe3   :  { %v1672_v12 = vmin.u32 %v821_v35, %v2612_v56  ;;  %v842_v3 = vsel %vm757_vm15, %v841_v58, %v817_v39  ;;  %v2631_v51 = vshrl.u32 %v409_v50, 5  ;;  %vm378_vm4 = vcmp.lt.s32.totalorder %v2584_v48, 2 }
  0xe4   :  { %v636_v33 = vadd.f32 1.0, %v632_v28  ;;  %v414_v24 = vshll.u32 %v2057_v27, %v411_v45  ;;  %v415_v54 = vshrl.u32 %v2058_v29, %v412_v34  ;;  %v417_v2 = vshll.u32 %v2058_v29, %v411_v45 }
  0xe5   :  { %v418_v8 = vshrl.u32 %v2059_v32, %v412_v34  ;;  %v823_v1 = vclz %v1672_v12  ;;  %v420_v22 = vshll.u32 %v2059_v32, %v411_v45  ;;  %v421_v15 = vshrl.u32 %v2060_v38, %v412_v34 }
  0xe6   :  { %1764 = vrsqrt.f32 %v636_v33  ;;  %v423_v16 = vshll.u32 %v2060_v38, %v411_v45  ;;  %v2643_v40 = vsel %vm744_vm11, nan, %v1166_v57  ;;  %v2645_v17 = vshll.u32 %v405_v4, 8 }
  0xe7   :  { %v2649_v20 = vand.u32 8388607, %v858_v25  ;;  %v2651_v21 = vadd.s32 1, %v1675_v11  ;;  %v1673_v14 = vadd.s32 4294967294, %v823_v1  ;;  %v2655_v31 = vsel %vm2601_vm2, 0, %v842_v3 }
  0xe8   :  { %v413_v26 = vshrl.u32 %v2057_v27, %v412_v34  ;;  %v424_v53 = vshrl.u32 %v2061_v43, %v412_v34  ;;  %v416_v0 = vor.u32 %v415_v54, %v414_v24  ;;  %v419_v39 = vor.u32 %v418_v8, %v417_v2 }
  0xe9   :  { %v426_v41 = vshll.u32 %v2061_v43, %v411_v45  ;;  %v427_v44 = vshrl.u32 %v2062_v55, %v412_v34  ;;  %vm1674_vm5 = vcmp.lt.s32.totalorder %v1673_v14, 0  ;;  %v422_v49 = vor.u32 %v421_v15, %v420_v22  ;;  %v1761_v23 = vpop.eup %1760 }
  0xea   :  { %v425_v50 = vor.u32 %v424_v53, %v423_v16  ;;  %vm429_vm6 = vcmp.lt.s32.totalorder %v2631_v51, 1  ;;  %vm387_vm7 = vcmp.eq.s32.totalorder %v2614_v37, 0  ;;  %vm390_vm8 = vcmp.eq.s32.totalorder %v2614_v37, 2  ;;  %v1763_v47 = vpop.eup %1762 }
  0xeb   :  { %v826_v63 = vsel %vm1674_vm5, 0, %v1673_v14  ;;  %vm430_vm9 = vcmp.lt.s32.totalorder %v2631_v51, 2  ;;  %vm431_vm10 = vcmp.lt.s32.totalorder %v2631_v51, 3  ;;  %vm432_vm11 = vcmp.lt.s32.totalorder %v2631_v51, 4 }
  0xec   :  { %v383_v46 = vxor.u32 2147483648, %v1761_v23  ;;  %v827_v9 = vsub.s32 32, %v826_v63  ;;  %v828_v45 = vshll.u32 %v2612_v56, %v826_v63  ;;  %v831_v18 = vsub.s32 4294967266, %v826_v63 }
  0xed   :  { %v380_v28 = vxor.u32 2147483648, %v1763_v47  ;;  %v428_v52 = vor.u32 %v427_v44, %v426_v41  ;;  %v433_v58 = vsel %vm429_vm6, %v413_v26, %v416_v0  ;;  %v434_v34 = vsel %vm432_vm11, %v422_v49, 2102212464  ;;  %v1529_v44 = vld [vmem:[#allocation7] sm:$0xff] }
  0xee   :  { %v384_v35 = vsel %vm382_vm0, %v383_v46, %v1763_v47  ;;  %vm386_vm12 = vcmp.lt.s32.totalorder %v2614_v37, 2  ;;  %v829_v57 = vshrl.u32 %v811_v60, %v827_v9  ;;  %v832_v4 = vadd.s32 127, %v831_v18 }
  0xef   :  { %v438_v56 = vsel %vm432_vm11, %v425_v50, 920167782  ;;  %v381_v3 = vsel %vm379_vm3, %v1761_v23, %v380_v28  ;;  %v437_v24 = vsel %vm429_vm6, %v416_v0, %v419_v39  ;;  %v435_v8 = vsel %vm431_vm10, %v419_v39, %v434_v34 }
  0xf0   :  { %v2672_v33 = vpop.eup %1764  ;;  %v385_v60 = vsel %vm378_vm4, %v381_v3, %v384_v35  ;;  %v830_v54 = vor.u32 %v829_v57, %v828_v45  ;;  %v833_v2 = vshll.u32 %v832_v4, 23  ;;  %v439_v1 = vsel %vm431_vm10, %v422_v49, %v438_v56 }
  0xf1   :  { %v2681_v11 = vmul.f32 %v2672_v33, %v2591_v62  ;;  %v1492_v12 = vmul.f32 %v2672_v33, %v2643_v40  ;;  %1766 = vrcp.f32 %v385_v60  ;;  %v441_v22 = vsel %vm429_vm6, %v419_v39, %v422_v49 }
  0xf2   :  { %v834_v15 = vor.u32 4788187, %v833_v2  ;;  %v837_v16 = vcvt.s32.f32 %v830_v54  ;;  %v440_v48 = vsel %vm430_vm9, %v437_v24, %v439_v1  ;;  %v442_v14 = vsel %vm432_vm11, %v428_v52, 1326507024  ;;  %v138_v52 = vld [vmem:[#allocation12 + $0x18] sm:$0xff] }
  0xf3   :  { %v1496_v62 = vmul.f32 %v2622_v42, %v2681_v11  ;;  %v443_v53 = vsel %vm431_vm10, %v425_v50, %v442_v14  ;;  %v2706_v0 = vmul.u32.u64.low %v2645_v17, %v440_v48  ;;  %v2707_v41 = vmul.u32.u64.high %v2645_v17, %v440_v48, %v2706_v0 }
  0xf4   :  { %v835_v63 = vand.u32 2147483647, %v834_v15  ;;  %v436_v39 = vsel %vm430_vm9, %v433_v58, %v435_v8  ;;  %v444_v49 = vsel %vm430_vm9, %v441_v22, %v443_v53  ;;  %vm869_vm13 = vcmp.gt.s32.totalorder %v2651_v21, 0 }
  0xf5   :  { %v1500_v26 = vadd.f32 %v1496_v62, %v1492_v12  ;;  %v2717_v45 = vmul.u32.u64.low %v2645_v17, %v444_v49  ;;  %v2718_v50 = vmul.u32.u64.high %v2645_v17, %v444_v49, %v2717_v45  ;;  %v870_v18 = vsel %vm869_vm13, %v2651_v21, 0 }
  0xf6   :  { %v389_v34 = vsel %vm387_vm7, %v1761_v23, %v380_v28  ;;  %v392_v58 = vsel %vm390_vm8, %v383_v46, %v1763_v47  ;;  %v838_v35 = vmul.f32 %v837_v16, %v835_v63  ;;  %v872_v51 = vand.u32 31, %v870_v18 }
  0xf7   :  { %v1533_v9 = vmul.f32 %v2459_v36, %v1500_v26  ;;  %vm374_vm14 = vweird.f32 %v2248_v10  ;;  %v452_v4 = vmul.u32 %v2645_v17, %v436_v39  ;;  %v455_v56 = vadd.s32 1, %v2707_v41 }
  0xf8   :  { %v839_v12 = vxor.u32 2147483648, %v838_v35  ;;  %v866_v3 = vor.u32 8388608, %v2649_v20  ;;  %v873_v21 = vsub.s32 32, %v872_v51  ;;  %v2730_v24 = vmul.f32 %v2240_v6, %v138_v52 }
  0xf9   :  { %v1537_v57 = vadd.f32 %v1533_v9, %v1529_v44  ;;  %v393_v23 = vsel %vm386_vm12, %v389_v34, %v392_v58  ;;  %v2735_v47 = vand.u32 3, %v2655_v31  ;;  %v1261_v46 = vadd.s32 3, %v2655_v31 }
  0xfa   :  { %vm454_vm1 = vc.u32 %v2718_v50, %v2706_v0  ;;  %v840_v17 = vsel %vm757_vm15, %v839_v12, %v838_v35  ;;  %v2743_v28 = vshrl.u32 %v870_v18, 5  ;;  %v875_v6 = vshll.u32 %v2057_v27, %v872_v51 }
  0xfb   :  { %1541 = vst [vmem:[#allocation16] sm:$0xff] %v1537_v57  ;;  %v456_v20 = vsel %vm454_vm1, %v455_v56, %v2707_v41  ;;  %v1767_v60 = vpop.eup %1766  ;;  %v843_v37 = vsel %vm2601_vm2, %v2340_v59, %v840_v17  ;;  %v878_v31 = vshll.u32 %v2058_v29, %v872_v51  ;;  %v881_v2 = vshll.u32 %v2059_v32, %v872_v51 }
  0xfc   :  { %v457_v54 = vadd.s32 %v456_v20, %v452_v4  ;;  %v395_v8 = vmul.f32 %v1767_v60, %v393_v23  ;;  %1768 = vcosq.f32 %v843_v37  ;;  %v884_v62 = vshll.u32 %v2060_v38, %v872_v51 }
  0xfd   :  { %v885_v1 = vshrl.u32 %v2061_v43, %v873_v21  ;;  %1770 = vsinq.f32 %v843_v37  ;;  %v876_v15 = vshrl.u32 %v2058_v29, %v873_v21  ;;  %v879_v16 = vshrl.u32 %v2059_v32, %v873_v21 }
  0xfe   :  { %v458_v22 = vadd.s32 536870912, %v457_v54  ;;  %v396_v7 = vsel %vm374_vm14, nan, %v395_v8  ;;  %v882_v48 = vshrl.u32 %v2060_v38, %v873_v21  ;;  %v887_v14 = vshll.u32 %v2061_v43, %v872_v51 }
  0xff   :  { %v888_v26 = vshrl.u32 %v2062_v55, %v873_v21  ;;  %v2761_v53 = vmul.f32 %v2456_v30, %v396_v7  ;;  %v2765_v44 = vshll.u32 %v866_v3, 8  ;;  %vm850_vm15 = vcmp.eq.s32.totalorder %v2735_v47, 0 }
 0x100   :  { %v2763_v41 = vshrl.u32 %v458_v22, 30  ;;  %v1262_v63 = vand.u32 3, %v1261_v46  ;;  %v886_v39 = vor.u32 %v885_v1, %v884_v62  ;;  %vm849_vm2 = vcmp.lt.s32.totalorder %v2735_v47, 2 }
 0x101   :  { %v889_v49 = vor.u32 %v888_v26, %v887_v14  ;;  %v633_v10 = vmul.f32 %v2761_v53, %v2761_v53  ;;  %vm853_vm0 = vcmp.eq.s32.totalorder %v2735_v47, 2  ;;  %vm893_vm3 = vcmp.lt.s32.totalorder %v2743_v28, 4  ;;  %v2812_v14 = vld [vmem:[#allocation10 + $0x8] sm:$0xff] }
 0x102   :  { %v460_v9 = vshll.u32 %v2763_v41, 30  ;;  %v877_v45 = vor.u32 %v876_v15, %v875_v6  ;;  %v880_v18 = vor.u32 %v879_v16, %v878_v31  ;;  %v883_v52 = vor.u32 %v882_v48, %v881_v2 }
 0x103   :  { %v515_v34 = vand.u32 2139095040, %v2730_v24  ;;  %v637_v58 = vadd.f32 1.0, %v633_v10  ;;  %vm890_vm4 = vcmp.lt.s32.totalorder %v2743_v28, 1  ;;  %vm892_vm5 = vcmp.lt.s32.totalorder %v2743_v28, 3 }
 0x104   :  { %v2775_v35 = vsub.s32 %v457_v54, %v460_v9  ;;  %vm1264_vm6 = vcmp.eq.s32.totalorder %v1262_v63, 0  ;;  %v874_v51 = vshrl.u32 %v2057_v27, %v873_v21  ;;  %v899_v57 = vsel %vm893_vm3, %v886_v39, 920167782 }
 0x105   :  { %v903_v4 = vsel %vm893_vm3, %v889_v49, 1326507024  ;;  %1772 = vrsqrt.f32 %v637_v58  ;;  %vm1267_vm7 = vcmp.eq.s32.totalorder %v1262_v63, 2  ;;  %v895_v12 = vsel %vm893_vm3, %v883_v52, 2102212464 }
 0x106   :  { %v463_v56 = vsub.s32 0, %v2775_v35  ;;  %v1769_v3 = vpop.eup %1768  ;;  %vm891_vm8 = vcmp.lt.s32.totalorder %v2743_v28, 2  ;;  %v898_v23 = vsel %vm890_vm4, %v877_v45, %v880_v18  ;;  %v902_v21 = vsel %vm890_vm4, %v880_v18, %v883_v52 }
 0x107   :  { %v904_v46 = vsel %vm892_vm5, %v886_v39, %v903_v4  ;;  %v1771_v17 = vpop.eup %1770  ;;  %v854_v20 = vxor.u32 2147483648, %v1769_v3  ;;  %v900_v60 = vsel %vm892_vm5, %v883_v52, %v899_v57  ;;  %v516_v37 = vshrl.u32 %v515_v34, 23 }
 0x108   :  { %v1660_v6 = vmin.u32 %v463_v56, %v2775_v35  ;;  %v851_v54 = vxor.u32 2147483648, %v1771_v17  ;;  %vm1263_vm9 = vcmp.lt.s32.totalorder %v1262_v63, 2  ;;  %v894_v31 = vsel %vm890_vm4, %v874_v51, %v877_v45 }
 0x109   :  { %v896_v2 = vsel %vm892_vm5, %v880_v18, %v895_v12  ;;  %v855_v8 = vsel %vm853_vm0, %v854_v20, %v1771_v17  ;;  %v1269_v62 = vsel %vm1267_vm7, %v854_v20, %v1771_v17  ;;  %v905_v22 = vsel %vm891_vm8, %v902_v21, %v904_v46 }
 0x10a   :  { %v465_v1 = vclz %v1660_v6  ;;  %vm847_vm10 = vweird.f32 %v2340_v59  ;;  %v852_v15 = vsel %vm850_vm15, %v1769_v3, %v851_v54  ;;  %v1266_v16 = vsel %vm1264_vm6, %v1769_v3, %v851_v54 }
 0x10b   :  { %v901_v7 = vsel %vm891_vm8, %v898_v23, %v900_v60  ;;  %v1270_v48 = vsel %vm1263_vm9, %v1266_v16, %v1269_v62  ;;  %v453_v26 = vadd.s32 %v2706_v0, %v2718_v50  ;;  %v1663_v49 = vadd.s32 4294967169, %v516_v37 }
 0x10c   :  { %v1661_v39 = vadd.s32 4294967294, %v465_v1  ;;  %v856_v10 = vsel %vm849_vm2, %v852_v15, %v855_v8  ;;  %v897_v9 = vsel %vm891_vm8, %v894_v31, %v896_v2  ;;  %v2826_v18 = vsel %vm847_vm10, nan, %v1270_v48  ;;  %v1530_v2 = vld [vmem:[#allocation7 + $0x8] sm:$0xff] }
 0x10d   :  { %v2821_v63 = vmul.u32.u64.low %v2765_v44, %v905_v22  ;;  %v2822_v45 = vmul.u32.u64.high %v2765_v44, %v905_v22, %v2821_v63  ;;  %v2829_v52 = vmul.u32.u64.low %v2765_v44, %v901_v7  ;;  %v2830_v0 = vmul.u32.u64.high %v2765_v44, %v901_v7, %v2829_v52 }
 0x10e   :  { %vm1662_vm11 = vcmp.lt.s32.totalorder %v1661_v39, 0  ;;  %v2835_v50 = vmul.f32 %v2430_v61, %v2812_v14  ;;  %v483_v28 = vsub.s32 4, %v2763_v41  ;;  %v522_v34 = vadd.s32 1, %v1663_v49 }
 0x10f   :  { %v468_v47 = vsel %vm1662_vm11, 0, %v1661_v39  ;;  %v2838_v58 = vpop.eup %1772  ;;  %v2842_v51 = vsel %vm847_vm10, nan, %v856_v10  ;;  %v913_v23 = vmul.u32 %v2765_v44, %v897_v9  ;;  %vm915_vm12 = vc.u32 %v2822_v45, %v2829_v52 }
 0x110   :  { %v469_v57 = vsub.s32 32, %v468_v47  ;;  %v470_v4 = vshll.u32 %v2775_v35, %v468_v47  ;;  %v473_v56 = vsub.s32 4294967266, %v468_v47  ;;  %v2847_v12 = vmul.f32 %v2838_v58, %v2761_v53 }
 0x111   :  { %v1493_v3 = vmul.f32 %v2838_v58, %v2826_v18  ;;  %v916_v46 = vadd.s32 1, %v2830_v0  ;;  %vm523_vm13 = vcmp.gt.s32.totalorder %v522_v34, 0  ;;  %vm399_vm14 = vcmp.lt.s32.totalorder %v2499_v5, 0 }
 0x112   :  { %v471_v21 = vshrl.u32 %v453_v26, %v469_v57  ;;  %v474_v59 = vadd.s32 127, %v473_v56  ;;  %v1497_v35 = vmul.f32 %v2842_v51, %v2847_v12  ;;  %v512_v53 = vand.u32 2147483647, %v2730_v24 }
 0x113   :  { %v524_v17 = vsel %vm523_vm13, %v522_v34, 0  ;;  %v484_v44 = vsel %vm399_vm14, %v483_v28, %v2763_v41  ;;  %v917_v60 = vsel %vm915_vm12, %v916_v46, %v2830_v0  ;;  %vm2865_vm1 = vcmp.le.f32.partialorder %v397_v19, 0.7853982 }
 0x114   :  { %v472_v20 = vor.u32 %v471_v21, %v470_v4  ;;  %v475_v6 = vshll.u32 %v474_v59, 23  ;;  %v1501_v37 = vadd.f32 %v1497_v35, %v1493_v3  ;;  %v918_v54 = vadd.s32 %v917_v60, %v913_v23  ;;  %v2889_v3 = vld [vmem:[#allocation9 + $0x18] sm:$0xff] }
 0x115   :  { %v526_v31 = vand.u32 31, %v524_v17  ;;  %v486_v15 = vsel %vm2865_vm1, 0, %v484_v44  ;;  %v519_v48 = vand.u32 8388607, %v512_v53  ;;  %v2874_v26 = vshrl.u32 %v524_v17, 5 }
 0x116   :  { %v476_v62 = vor.u32 4788187, %v475_v6  ;;  %v479_v1 = vcvt.s32.f32 %v472_v20  ;;  %v1534_v22 = vmul.f32 %v2835_v50, %v1501_v37  ;;  %v919_v41 = vadd.s32 536870912, %v918_v54 }
 0x117   :  { %v527_v16 = vsub.s32 32, %v526_v31  ;;  %v529_v19 = vshll.u32 %v2057_v27, %v526_v31  ;;  %v532_v9 = vshll.u32 %v2058_v29, %v526_v31  ;;  %v538_v47 = vshll.u32 %v2060_v38, %v526_v31 }
 0x118   :  { %v477_v7 = vand.u32 2147483647, %v476_v62  ;;  %v1538_v39 = vadd.f32 %v1534_v22, %v1530_v2  ;;  %v2877_v49 = vshrl.u32 %v919_v41, 30  ;;  %v2884_v34 = vand.u32 3, %v486_v15 }
 0x119   :  { %v530_v10 = vshrl.u32 %v2058_v29, %v527_v16  ;;  %v533_v0 = vshrl.u32 %v2059_v32, %v527_v16  ;;  %v539_v28 = vshrl.u32 %v2061_v43, %v527_v16  ;;  %v535_v4 = vshll.u32 %v2059_v32, %v526_v31 }
 0x11a   :  { %v480_v63 = vmul.f32 %v479_v1, %v477_v7  ;;  %1542 = vst [vmem:[#allocation16 + $0x8] sm:$0xff] %v1538_v39  ;;  %v921_v57 = vshll.u32 %v2877_v49, 30  ;;  %v536_v56 = vshrl.u32 %v2060_v38, %v527_v16  ;;  %v491_v21 = vadd.s32 3, %v486_v15 }
 0x11b   :  { %v520_v59 = vor.u32 8388608, %v519_v48  ;;  %v531_v46 = vor.u32 %v530_v10, %v529_v19  ;;  %v534_v17 = vor.u32 %v533_v0, %v532_v9  ;;  %v541_v20 = vshll.u32 %v2061_v43, %v526_v31 }
 0x11c   :  { %v481_v23 = vxor.u32 2147483648, %v480_v63  ;;  %v2891_v35 = vsub.s32 %v918_v54, %v921_v57  ;;  %v542_v6 = vshrl.u32 %v2062_v55, %v527_v16  ;;  %v540_v60 = vor.u32 %v539_v28, %v538_v47 }
 0x11d   :  { %vm544_vm15 = vcmp.lt.s32.totalorder %v2874_v26, 1  ;;  %v964_v37 = vand.u32 2139095040, %v2889_v3  ;;  %vm860_vm2 = vcmp.lt.s32.totalorder %v2571_v13, 0  ;;  %v537_v62 = vor.u32 %v536_v56, %v535_v4 }
 0x11e   :  { %v482_v44 = vsel %vm399_vm14, %v481_v23, %v480_v63  ;;  %v924_v54 = vsub.s32 0, %v2891_v35  ;;  %vm547_vm0 = vcmp.lt.s32.totalorder %v2874_v26, 4  ;;  %vm545_vm3 = vcmp.lt.s32.totalorder %v2874_v26, 2 }
 0x11f   :  { %v485_v2 = vsel %vm2865_vm1, %v2499_v5, %v482_v44  ;;  %vm546_vm4 = vcmp.lt.s32.totalorder %v2874_v26, 3  ;;  %v2907_v31 = vshll.u32 %v520_v59, 8  ;;  %v543_v22 = vor.u32 %v542_v6, %v541_v20 }
 0x120   :  { %1774 = vcosq.f32 %v485_v2  ;;  %v1676_v1 = vmin.u32 %v924_v54, %v2891_v35  ;;  %v552_v8 = vsel %vm544_vm15, %v531_v46, %v534_v17  ;;  %vm2914_vm5 = vcmp.le.f32.partialorder %v858_v25, 0.7853982 }
 0x121   :  { %1776 = vsinq.f32 %v485_v2  ;;  %v528_v41 = vshrl.u32 %v2057_v27, %v527_v16  ;;  %v553_v7 = vsel %vm547_vm0, %v540_v60, 920167782  ;;  %v961_v48 = vand.u32 2147483647, %v2889_v3 }
 0x122   :  { %v965_v19 = vshrl.u32 %v964_v37, 23  ;;  %v2922_v39 = vand.u32 3, %v491_v21  ;;  %v926_v10 = vclz %v1676_v1  ;;  %v549_v9 = vsel %vm547_vm0, %v537_v62, 2102212464 }
 0x123   :  { %v554_v25 = vsel %vm546_vm4, %v537_v62, %v553_v7  ;;  %vm493_vm6 = vcmp.lt.s32.totalorder %v2884_v34, 2  ;;  %vm494_vm7 = vcmp.eq.s32.totalorder %v2884_v34, 0  ;;  %v944_v16 = vsub.s32 4, %v2877_v49 }
 0x124   :  { %v555_v63 = vsel %vm545_vm3, %v552_v8, %v554_v25  ;;  %v556_v0 = vsel %vm544_vm15, %v534_v17, %v537_v62  ;;  %v1677_v47 = vadd.s32 4294967294, %v926_v10  ;;  %v557_v28 = vsel %vm547_vm0, %v543_v22, 1326507024 }
 0x125   :  { %v2938_v57 = vmul.u32.u64.low %v2907_v31, %v555_v63  ;;  %v2939_v4 = vmul.u32.u64.high %v2907_v31, %v555_v63, %v2938_v57  ;;  %v548_v56 = vsel %vm544_vm15, %v528_v41, %v531_v46  ;;  %v550_v23 = vsel %vm546_vm4, %v534_v17, %v549_v9 }
 0x126   :  { %v558_v21 = vsel %vm546_vm4, %v540_v60, %v557_v28  ;;  %v1679_v59 = vadd.s32 4294967169, %v965_v19  ;;  %vm497_vm8 = vcmp.eq.s32.totalorder %v2884_v34, 2  ;;  %v914_v20 = vadd.s32 %v2829_v52, %v2822_v45 }
 0x127   :  { %vm1678_vm9 = vcmp.lt.s32.totalorder %v1677_v47, 0  ;;  %v559_v6 = vsel %vm545_vm3, %v556_v0, %v558_v21  ;;  %v945_v46 = vsel %vm860_vm2, %v944_v16, %v2877_v49  ;;  %v551_v45 = vsel %vm545_vm3, %v548_v56, %v550_v23 }
 0x128   :  { %v929_v44 = vsel %vm1678_vm9, 0, %v1677_v47  ;;  %v2957_v17 = vmul.u32.u64.low %v2907_v31, %v559_v6  ;;  %v2958_v37 = vmul.u32.u64.high %v2907_v31, %v559_v6, %v2957_v17  ;;  %v570_v62 = vadd.s32 1, %v2939_v4 }
 0x129   :  { %v930_v60 = vsub.s32 32, %v929_v44  ;;  %v931_v2 = vshll.u32 %v2891_v35, %v929_v44  ;;  %v934_v54 = vsub.s32 4294967266, %v929_v44  ;;  %v971_v1 = vadd.s32 1, %v1679_v59 }
 0x12a   :  { %v1775_v52 = vpop.eup %1774  ;;  %v2966_v22 = vmul.f32 %v2672_v33, %v2622_v42  ;;  %v2970_v49 = vmul.f32 %v2643_v40, %v2681_v11  ;;  %v947_v26 = vsel %vm2914_vm5, 0, %v945_v46  ;;  %v567_v10 = vmul.u32 %v2907_v31, %v551_v45 }
 0x12b   :  { %v1777_v8 = vpop.eup %1776  ;;  %v498_v41 = vxor.u32 2147483648, %v1775_v52  ;;  %v932_v7 = vshrl.u32 %v914_v20, %v930_v60  ;;  %v935_v35 = vadd.s32 127, %v934_v54  ;;  %vm569_vm10 = vc.u32 %v2958_v37, %v2938_v57 }
 0x12c   :  { %v495_v19 = vxor.u32 2147483648, %v1777_v8  ;;  %vm972_vm11 = vcmp.gt.s32.totalorder %v971_v1, 0  ;;  %vm502_vm12 = vcmp.eq.s32.totalorder %v2922_v39, 0  ;;  %v571_v25 = vsel %vm569_vm10, %v570_v62, %v2939_v4 }
 0x12d   :  { %v499_v42 = vsel %vm497_vm8, %v498_v41, %v1777_v8  ;;  %v933_v40 = vor.u32 %v932_v7, %v931_v2  ;;  %v936_v33 = vshll.u32 %v935_v35, 23  ;;  %v968_v16 = vand.u32 8388607, %v961_v48 }
 0x12e   :  { %v496_v9 = vsel %vm494_vm7, %v1775_v52, %v495_v19  ;;  %v973_v31 = vsel %vm972_vm11, %v971_v1, 0  ;;  %v1365_v28 = vadd.s32 3, %v947_v26  ;;  %vm505_vm13 = vcmp.eq.s32.totalorder %v2922_v39, 2 }
 0x12f   :  { %v500_v63 = vsel %vm493_vm6, %v496_v9, %v499_v42  ;;  %v937_v0 = vor.u32 4788187, %v936_v33  ;;  %v940_v47 = vcvt.s32.f32 %v933_v40  ;;  %v572_v56 = vadd.s32 %v571_v25, %v567_v10 }
 0x130   :  { %1778 = vrcp.f32 %v500_v63  ;;  %v975_v23 = vand.u32 31, %v973_v31  ;;  %vm501_vm14 = vcmp.lt.s32.totalorder %v2922_v39, 2  ;;  %v1488_v4 = vsub.f32 %v2966_v22, %v2970_v49  ;;  %v1513_v22 = vld [vmem:[#allocation6] sm:$0xff] }
 0x131   :  { %v938_v21 = vand.u32 2147483647, %v937_v0  ;;  %vm489_vm1 = vweird.f32 %v2499_v5  ;;  %v2992_v59 = vand.u32 3, %v947_v26  ;;  %v573_v34 = vadd.s32 536870912, %v572_v56 }
 0x132   :  { %v969_v20 = vor.u32 8388608, %v968_v16  ;;  %v976_v6 = vsub.s32 32, %v975_v23  ;;  %v504_v44 = vsel %vm502_vm12, %v1775_v52, %v495_v19  ;;  %v507_v46 = vsel %vm505_vm13, %v498_v41, %v1777_v8 }
 0x133   :  { %v941_v17 = vmul.f32 %v940_v47, %v938_v21  ;;  %v2996_v60 = vand.u32 3, %v1365_v28  ;;  %v2998_v2 = vshrl.u32 %v573_v34, 30  ;;  %v978_v54 = vshll.u32 %v2057_v27, %v975_v23 }
 0x134   :  { %v981_v45 = vshll.u32 %v2058_v29, %v975_v23  ;;  %v987_v62 = vshll.u32 %v2060_v38, %v975_v23  ;;  %v979_v7 = vshrl.u32 %v2058_v29, %v976_v6  ;;  %v982_v35 = vshrl.u32 %v2059_v32, %v976_v6 }
 0x135   :  { %v942_v1 = vxor.u32 2147483648, %v941_v17  ;;  %v988_v26 = vshrl.u32 %v2061_v43, %v976_v6  ;;  %v575_v52 = vshll.u32 %v2998_v2, 30  ;;  %v3007_v8 = vshrl.u32 %v973_v31, 5 }
 0x136   :  { %v984_v41 = vshll.u32 %v2059_v32, %v975_v23  ;;  %v3010_v19 = vshll.u32 %v969_v20, 8  ;;  %v985_v42 = vshrl.u32 %v2060_v38, %v976_v6  ;;  %v990_v40 = vshll.u32 %v2061_v43, %v975_v23 }
 0x137   :  { %v943_v10 = vsel %vm860_vm2, %v942_v1, %v941_v17  ;;  %v991_v29 = vshrl.u32 %v2062_v55, %v976_v6  ;;  %v508_v33 = vsel %vm501_vm14, %v504_v44, %v507_v46  ;;  %v3022_v25 = vsub.s32 %v572_v56, %v575_v52  ;;  %v3067_v46 = vld [vmem:[#allocation10] sm:$0xff] }
 0x138   :  { %v946_v9 = vsel %vm2914_vm5, %v2571_v13, %v943_v10  ;;  %v977_v32 = vshrl.u32 %v2057_v27, %v976_v6  ;;  %v980_v16 = vor.u32 %v979_v7, %v978_v54  ;;  %v983_v31 = vor.u32 %v982_v35, %v981_v45 }
 0x139   :  { %1780 = vcosq.f32 %v946_v9  ;;  %v989_v63 = vor.u32 %v988_v26, %v987_v62  ;;  %v578_v43 = vsub.s32 0, %v3022_v25  ;;  %vm993_vm15 = vcmp.lt.s32.totalorder %v3007_v8, 1 }
 0x13a   :  { %v1779_v38 = vpop.eup %1778  ;;  %1782 = vsinq.f32 %v946_v9  ;;  %v3029_v55 = vmul.f32 %v2838_v58, %v2842_v51  ;;  %vm956_vm2 = vcmp.eq.s32.totalorder %v2992_v59, 2  ;;  %vm1371_vm0 = vcmp.eq.s32.totalorder %v2996_v60, 2 }
 0x13b   :  { %v510_v15 = vmul.f32 %v1779_v38, %v508_v33  ;;  %v986_v27 = vor.u32 %v985_v42, %v984_v41  ;;  %v992_v39 = vor.u32 %v991_v29, %v990_v40  ;;  %vm996_vm3 = vcmp.lt.s32.totalorder %v3007_v8, 4 }
 0x13c   :  { %vm953_vm4 = vcmp.eq.s32.totalorder %v2992_v59, 0  ;;  %vm1368_vm5 = vcmp.eq.s32.totalorder %v2996_v60, 0  ;;  %v1664_v0 = vmin.u32 %v578_v43, %v3022_v25  ;;  %vm994_vm6 = vcmp.lt.s32.totalorder %v3007_v8, 2 }
 0x13d   :  { %vm995_vm7 = vcmp.lt.s32.totalorder %v3007_v8, 3  ;;  %v997_v58 = vsel %vm993_vm15, %v977_v32, %v980_v16  ;;  %v511_v51 = vsel %vm489_vm1, nan, %v510_v15  ;;  %vm952_vm8 = vcmp.lt.s32.totalorder %v2992_v59, 2 }
 0x13e   :  { %vm1367_vm9 = vcmp.lt.s32.totalorder %v2996_v60, 2  ;;  %v998_v47 = vsel %vm996_vm3, %v986_v27, 2102212464  ;;  %v1001_v28 = vsel %vm993_vm15, %v980_v16, %v983_v31  ;;  %v1002_v56 = vsel %vm996_vm3, %v989_v63, 920167782 }
 0x13f   :  { %v3054_v23 = vmul.f32 %v2456_v30, %v511_v51  ;;  %vm950_vm10 = vweird.f32 %v2571_v13  ;;  %v568_v5 = vadd.s32 %v2938_v57, %v2958_v37  ;;  %v580_v21 = vclz %v1664_v0 }
 0x140   :  { %v1485_v34 = vmul.f32 %v2826_v18, %v2847_v12  ;;  %v999_v20 = vsel %vm995_vm7, %v983_v31, %v998_v47  ;;  %v1003_v6 = vsel %vm995_vm7, %v986_v27, %v1002_v56  ;;  %v1005_v44 = vsel %vm993_vm15, %v983_v31, %v986_v27  ;;  %v1514_v27 = vld [vmem:[#allocation6 + $0x8] sm:$0xff]  ;;  %v3125_v47 = vld [vmem:[%s3308_s7] sm:$0xff]  ;;  %s2063_s7 = smov [#allocation19]  }
 0x141   :  { %v1545_v17 = vmul.f32 %v3067_v46, %v2681_v11  ;;  %v634_v57 = vmul.f32 %v3054_v23, %v3054_v23  ;;  %v1665_v37 = vadd.s32 4294967294, %v580_v21  ;;  %v1000_v18 = vsel %vm994_vm6, %v997_v58, %v999_v20  ;;  %s1619_s26 = sshll.u32 %s2063_s7, 4  ;;  %s1620_s26 = int_to_ptr.vmem [resolvable:$true] %s1619_s26 }
 0x142   :  { %v1004_v54 = vsel %vm994_vm6, %v1001_v28, %v1003_v6  ;;  %v1006_v45 = vsel %vm996_vm3, %v992_v39, 1326507024  ;;  %v1016_v11 = vmul.u32 %v3010_v19, %v1000_v18  ;;  %v1517_v26 = vmul.f32 %v2459_v36, %v1488_v4  ;;  %s1944_s27 = scalar_lea.vmem %s1620_s26, 512  ;;  %p1949_p10 = scmp.lt.s32.totalorder %s1620_s26, %s1620_s26 }
 0x143   :  { %v3080_v62 = vmul.u32.u64.low %v3010_v19, %v1004_v54  ;;  %v3081_v1 = vmul.u32.u64.high %v3010_v19, %v1004_v54, %v3080_v62  ;;  %v638_v7 = vadd.f32 1.0, %v634_v57  ;;  %vm1666_vm11 = vcmp.lt.s32.totalorder %v1665_v37, 0  ;;  %v1781_v52 = vpop.eup %1780  ;;  %p1945_p9 = scmp.ne.s32.totalorder %s1620_s26, %s1944_s27  ;;  %p1950_p11 = scmp.lt.s32.totalorder %s1944_s27, %s1944_s27 }
 0x144   :  { %v1007_v35 = vsel %vm995_vm7, %v989_v63, %v1006_v45  ;;  %v583_v41 = vsel %vm1666_vm11, 0, %v1665_v37  ;;  %v1489_v42 = vsub.f32 %v3029_v55, %v1485_v34  ;;  %v3095_v40 = vstv %s3034_s2  ;;  %v1783_v29 = vpop.eup %1782  ;;  %v3110_v63 = vld [vmem:[#allocation10 + $0x10] sm:$0xff]  ;;  %v139_v34 = vld [vmem:[#allocation13] sm:$0xff] }
 0x145   :  { %v1008_v10 = vsel %vm994_vm6, %v1005_v44, %v1007_v35  ;;  %1784 = vrsqrt.f32 %v638_v7  ;;  %v957_v33 = vxor.u32 2147483648, %v1781_v52  ;;  %v584_v9 = vsub.s32 32, %v583_v41  ;;  %v1799_v37 = vld [vmem:[#allocation9] sm:$0xff]  ;;  %p1951_p12 = por %p1950_p11, %p1949_p10 }
 0x146   :  { %v585_v32 = vshll.u32 %v3022_v25, %v583_v41  ;;  %v954_v36 = vxor.u32 2147483648, %v1783_v29  ;;  %v588_v49 = vsub.s32 4294967266, %v583_v41  ;;  %v1019_v25 = vadd.s32 1, %v3081_v1 }
 0x147   :  { %v3103_v4 = vmul.u32.u64.low %v3010_v19, %v1008_v10  ;;  %v3104_v8 = vmul.u32.u64.high %v3010_v19, %v1008_v10, %v3103_v4  ;;  %v958_v16 = vsel %vm956_vm2, %v957_v33, %v1783_v29  ;;  %v1373_v31 = vsel %vm1371_vm0, %v957_v33, %v1783_v29  ;;  %v140_v33 = vld [vmem:[#allocation13 + $0x8] sm:$0xff]  ;;  %p1952_p13 = pnand %p1951_p12, %p1945_p9 }
 0x148   :  { %v586_v38 = vshrl.u32 %v568_v5, %v584_v9  ;;  %v955_v43 = vsel %vm953_vm4, %v1781_v52, %v954_v36  ;;  %v1370_v55 = vsel %vm1368_vm5, %v1781_v52, %v954_v36  ;;  %v589_v15 = vadd.s32 127, %v588_v49 }
 0x149   :  { %v1521_v19 = vadd.f32 %v1517_v26, %v1513_v22  ;;  %v959_v39 = vsel %vm952_vm8, %v955_v43, %v958_v16  ;;  %v1374_v0 = vsel %vm1367_vm9, %v1370_v55, %v1373_v31  ;;  %v1518_v51 = vmul.f32 %v2835_v50, %v1489_v42 }
 0x14a   :  { %v587_v58 = vor.u32 %v586_v38, %v585_v32  ;;  %v960_v28 = vsel %vm950_vm10, nan, %v959_v39  ;;  %v1375_v56 = vsel %vm950_vm10, nan, %v1374_v0  ;;  %v1511_v59 = vmul.f32 %v2430_v61, %v3110_v63  ;;  %v1531_v39 = vld [vmem:[#allocation7 + $0x10] sm:$0xff] }
 0x14b   :  { %v590_v60 = vshll.u32 %v589_v15, 23  ;;  %1525 = vst [vmem:[#allocation15] sm:$0xff] %v1521_v19  ;;  %vm1018_vm12 = vc.u32 %v3104_v8, %v3080_v62  ;;  %v1522_v50 = vadd.f32 %v1518_v51, %v1514_v27  ;;  %v1550_v21 = vmul.f32 %v3095_v40, %v1545_v17 }
 0x14c   :  { %v594_v5 = vcvt.s32.f32 %v587_v58  ;;  %v1020_v6 = vsel %vm1018_vm12, %v1019_v25, %v3081_v1  ;;  %v1546_v13 = vmul.f32 %v2812_v14, %v2847_v12  ;;  %v144_v44 = vunpack.c.0.s8 %v3125_v47 }
 0x14d   :  { %v591_v20 = vor.u32 4788187, %v590_v60  ;;  %v1021_v57 = vadd.s32 %v1020_v6, %v1016_v11  ;;  %1526 = vst [vmem:[#allocation15 + $0x8] sm:$0xff] %v1522_v50  ;;  %v1554_v18 = vadd.f32 %v1799_v37, %v1550_v21  ;;  %v3141_v54 = vstv %s3097_s18  ;;  %v142_v37 = vld [vmem:[#allocation13 + $0x18] sm:$0xff] }
 0x14e   :  { %v3144_v45 = vstv %s3100_s24  ;;  %v1551_v17 = vmul.f32 %v3095_v40, %v1546_v13  ;;  %vm3147_vm13 = vcmp.ne.s32.totalorder %v144_v44, 0  ;;  %v153_v1 = vmul.f32 %v3141_v54, %v139_v34  ;;  %v141_v34 = vld [vmem:[#allocation13 + $0x10] sm:$0xff] }
 0x14f   :  { %v592_v7 = vand.u32 2147483647, %v591_v20  ;;  %v1785_v12 = vpop.eup %1784  ;;  %vm3154_vm14 = vcmp.le.f32.partialorder %v512_v53, 0.7853982  ;;  %vm514_vm1 = vcmp.lt.s32.totalorder %v2730_v24, 0  ;;  %v1022_v26 = vadd.s32 536870912, %v1021_v57 }
 0x150   :  { %1558 = vst [vmem:[#allocation18] sm:$0xff] %v1554_v18  ;;  %v145_v52 = vunpack.c.1.s8 %v3125_v47  ;;  %v646_v41 = vmul.f32 %v1785_v12, %v3054_v23  ;;  %v1494_v10 = vmul.f32 %v1785_v12, %v1375_v56  ;;  %v1482_v29 = vmul.f32 %v1785_v12, %v960_v28  ;;  %v1800_v53 = vld [vmem:[#allocation9 + $0x8] sm:$0xff]  ;;  %v1801_v13 = vld [vmem:[#allocation9 + $0x10] sm:$0xff] }
 0x151   :  { %v595_v42 = vmul.f32 %v594_v5, %v592_v7  ;;  %v598_v9 = vsub.s32 4, %v2998_v2  ;;  %v3162_v32 = vshrl.u32 %v1022_v26, 30  ;;  %v1555_v22 = vadd.f32 %v1800_v53, %v1551_v17 }
 0x152   :  { %v158_v36 = vsel %vm3147_vm13, %v3144_v45, %v153_v1  ;;  %v1498_v49 = vmul.f32 %v960_v28, %v646_v41  ;;  %v1486_v16 = vmul.f32 %v1375_v56, %v646_v41  ;;  %v1547_v31 = vmul.f32 %v3110_v63, %v646_v41  ;;  %v1515_v28 = vld [vmem:[#allocation6 + $0x10] sm:$0xff] }
 0x153   :  { %v596_v4 = vxor.u32 2147483648, %v595_v42  ;;  %v1024_v23 = vshll.u32 %v3162_v32, 30  ;;  %1559 = vst [vmem:[#allocation18 + $0x8] sm:$0xff] %v1555_v22  ;;  %v1562_v38 = vmul.f32 %v2430_v61, %v158_v36  ;;  %vm3170_vm15 = vcmp.ne.s32.totalorder %v145_v52, 0 }
 0x154   :  { %v154_v43 = vmul.f32 %v3141_v54, %v140_v33  ;;  %v1502_v55 = vadd.f32 %v1498_v49, %v1494_v10  ;;  %v1490_v19 = vsub.f32 %v1482_v29, %v1486_v16  ;;  %v1552_v27 = vmul.f32 %v3095_v40, %v1547_v31 }
 0x155   :  { %v597_v15 = vsel %vm514_vm1, %v596_v4, %v595_v42  ;;  %v599_v0 = vsel %vm514_vm1, %v598_v9, %v2998_v2  ;;  %v3184_v51 = vsub.s32 %v1021_v57, %v1024_v23  ;;  %v1566_v56 = vadd.f32 %v3067_v46, %v1562_v38  ;;  %v3208_v4 = vld [vmem:[#allocation10 + $0x18] sm:$0xff] }
 0x156   :  { %v600_v58 = vsel %vm3154_vm14, %v2730_v24, %v597_v15  ;;  %v1535_v60 = vmul.f32 %v1511_v59, %v1502_v55  ;;  %v1519_v5 = vmul.f32 %v1511_v59, %v1490_v19  ;;  %v146_v50 = vunpack.c.2.s8 %v3125_v47 }
 0x157   :  { %1786 = vcosq.f32 %v600_v58  ;;  %v1027_v21 = vsub.s32 0, %v3184_v51  ;;  %v159_v2 = vsel %vm3170_vm15, %v3144_v45, %v154_v43  ;;  %v1556_v44 = vadd.f32 %v1801_v13, %v1552_v27 }
 0x158   :  { %1788 = vsinq.f32 %v600_v58  ;;  %v1539_v20 = vadd.f32 %v1535_v60, %v1531_v39  ;;  %v1523_v6 = vadd.f32 %v1519_v5, %v1515_v28  ;;  %v1570_v57 = vmax.f32 %v1566_v56, 0.0 }
 0x159   :  { %v601_v46 = vsel %vm3154_vm14, 0, %v599_v0  ;;  %v1680_v59 = vmin.u32 %v1027_v21, %v3184_v51  ;;  %1560 = vst [vmem:[#allocation18 + $0x10] sm:$0xff] %v1556_v44  ;;  %v1563_v18 = vmul.f32 %v2430_v61, %v159_v2  ;;  %vm150_vm2 = vcmp.ne.s32.totalorder %v146_v50, 0 }
 0x15a   :  { %1543 = vst [vmem:[#allocation16 + $0x10] sm:$0xff] %v1539_v20  ;;  %1527 = vst [vmem:[#allocation15 + $0x10] sm:$0xff] %v1523_v6  ;;  %v155_v7 = vmul.f32 %v3141_v54, %v141_v34  ;;  %v147_v35 = vunpack.c.3.s8 %v3125_v47  ;;  %v156_v1 = vmul.f32 %v3141_v54, %v142_v37  ;;  %v605_v12 = vand.u32 3, %v601_v46 }
 0x15b   :  { %1574 = vst [vmem:[#allocation19] sm:$0xff] %v1570_v57  ;;  %v1029_v17 = vclz %v1680_v59  ;;  %v1567_v11 = vadd.f32 %v1563_v18, %v2812_v14  ;;  %v606_v29 = vadd.s32 3, %v601_v46  ;;  %v1017_v33 = vadd.s32 %v3080_v62, %v3104_v8 }
 0x15c   :  { %v160_v52 = vsel %vm150_vm2, %v3144_v45, %v155_v7  ;;  %vm151_vm0 = vcmp.ne.s32.totalorder %v147_v35, 0  ;;  %vm609_vm4 = vcmp.eq.s32.totalorder %v605_v12, 0  ;;  %vm612_vm5 = vcmp.eq.s32.totalorder %v605_v12, 2 }
 0x15d   :  { %v1681_v26 = vadd.s32 4294967294, %v1029_v17  ;;  %v1571_v41 = vmax.f32 %v1567_v11, 0.0  ;;  %v1564_v10 = vmul.f32 %v2430_v61, %v160_v52  ;;  %v161_v42 = vsel %vm151_vm0, %v3144_v45, %v156_v1 }
 0x15e   :  { %v1565_v47 = vmul.f32 %v2430_v61, %v161_v42  ;;  %vm608_vm6 = vcmp.lt.s32.totalorder %v605_v12, 2 }
 0x15f   :  { %vm1682_vm3 = vcmp.lt.s32.totalorder %v1681_v26, 0  ;;  %1575 = vst [vmem:[#allocation19 + $0x8] sm:$0xff] %v1571_v41  ;;  %v1568_v9 = vadd.f32 %v1564_v10, %v3110_v63  ;;  %v607_v63 = vand.u32 3, %v606_v29 }
 0x160   :  { %v1032_v14 = vsel %vm1682_vm3, 0, %v1681_v26  ;;  %v1569_v16 = vadd.f32 %v1565_v47, %v3208_v4 }
 0x161   :  { %v1787_v54 = vpop.eup %1786  ;;  %v1033_v36 = vsub.s32 32, %v1032_v14  ;;  %v1034_v49 = vshll.u32 %v3184_v51, %v1032_v14  ;;  %v1037_v45 = vsub.s32 4294967266, %v1032_v14  ;;  %v1572_v8 = vmax.f32 %v1568_v9, 0.0 }
 0x162   :  { %v1789_v53 = vpop.eup %1788  ;;  %v613_v22 = vxor.u32 2147483648, %v1787_v54  ;;  %v1573_v43 = vmax.f32 %v1569_v16, 0.0 }
 0x163   :  { %v610_v62 = vxor.u32 2147483648, %v1789_v53  ;;  %v1035_v23 = vshrl.u32 %v1017_v33, %v1033_v36  ;;  %v1038_v38 = vadd.s32 127, %v1037_v45  ;;  %1576 = vst [vmem:[#allocation19 + $0x10] sm:$0xff] %v1572_v8 }
 0x164   :  { %v614_v31 = vsel %vm612_vm5, %v613_v22, %v1789_v53  ;;  %1577 = vst [vmem:[#allocation19 + $0x18] sm:$0xff] %v1573_v43 }
 0x165   :  { %v611_v25 = vsel %vm609_vm4, %v1787_v54, %v610_v62  ;;  %v1036_v15 = vor.u32 %v1035_v23, %v1034_v49  ;;  %v1039_v19 = vshll.u32 %v1038_v38, 23 }
 0x166   :  { %v615_v55 = vsel %vm608_vm6, %v611_v25, %v614_v31 }
 0x167   :  { %1790 = vrcp.f32 %v615_v55  ;;  %v1040_v27 = vor.u32 4788187, %v1039_v19  ;;  %v1043_v39 = vcvt.s32.f32 %v1036_v15 }
 0x168   :  { %1955 = shalt.err (!%p1952_p13)
}
 0x169   :  { %s1956_s19 = scalar_lea.hbm %s3312_s11, 512 }
 0x16a   :  { %p1957_p0 = scmp.ne.s32.totalorder %s3312_s11, %s1956_s19  ;;  %p1960_p1 = scmp.lt.u32.totalorder %s1956_s19, %s3312_s11 }
 0x16c   :  { %p1962_p2 = pnand %p1960_p1, %p1957_p0 }
 0x16e   :  { %1965 = shalt.err (!%p1962_p2)
}
 0x16f   :  { %1625 = dma.vmem_to_hbm [thread:$0]  %s1620_s26, 512, %s3312_s11, [#allocation20], %s2050_s29, %s2050_s29, %s2051_s30   ;;  %vm617_vm7 = vcmp.eq.s32.totalorder %v607_v63, 0  ;;  %vm620_vm8 = vcmp.eq.s32.totalorder %v607_v63, 2  ;;  %v1041_v0 = vand.u32 2147483647, %v1040_v27  ;;  %vm604_vm12 = vweird.f32 %v2730_v24 }
 0x170   :  { %v1047_v58 = vsub.s32 4, %v3162_v32  ;;  %vm616_vm9 = vcmp.lt.s32.totalorder %v607_v63, 2  ;;  %v619_v51 = vsel %vm617_vm7, %v1787_v54, %v610_v62  ;;  %v622_v28 = vsel %vm620_vm8, %v613_v22, %v1789_v53  ;;  %v1532_v36 = vld [vmem:[#allocation7 + $0x18] sm:$0xff]  ;;  %s2064_s11 = smov [#allocation16]   ;;  %s2065_s1 = smov [#allocation15]  }
 0x171   :  { %v1044_v56 = vmul.f32 %v1043_v39, %v1041_v0  ;;  %vm963_vm10 = vcmp.lt.s32.totalorder %v2889_v3, 0  ;;  %vm962_vm11 = vcmp.le.f32.partialorder %v961_v48, 0.7853982  ;;  %v623_v50 = vsel %vm616_vm9, %v619_v51, %v622_v28  ;;  %v1791_v2 = vpop.eup %1790  ;;  %v1516_v49 = vld [vmem:[#allocation6 + $0x18] sm:$0xff]  ;;  %s1595_s17 = sshll.u32 %s2064_s11, 4  ;;  %s1583_s20 = sshll.u32 %s2065_s1, 4  ;;  %s1596_s17 = int_to_ptr.vmem [resolvable:$true] %s1595_s17  ;;  %s3242_s20 = int_to_ptr.vmem [resolvable:$true] %s1583_s20 }
 0x172   :  { %v1048_v5 = vsel %vm963_vm10, %v1047_v58, %v3162_v32  ;;  %v625_v6 = vmul.f32 %v1791_v2, %v623_v50  ;;  %vm1053_vm3 = vweird.f32 %v2889_v3  ;;  %v1512_v47 = vmul.f32 %v2430_v61, %v3208_v4  ;;  %s2066_s5 = smov [#allocation18]   ;;  %s1966_s22 = scalar_lea.vmem %s1596_s17, 512 }
 0x173   :  { %v1045_v60 = vxor.u32 2147483648, %v1044_v56  ;;  %v1050_v20 = vsel %vm962_vm11, 0, %v1048_v5  ;;  %s1607_s21 = sshll.u32 %s2066_s5, 4  ;;  %p1967_p3 = scmp.ne.s32.totalorder %s1596_s17, %s1966_s22  ;;  %s3244_s21 = int_to_ptr.vmem [resolvable:$true] %s1607_s21 }
 0x174   :  { %v626_v13 = vsel %vm604_vm12, nan, %v625_v6  ;;  %v1469_v44 = vadd.s32 3, %v1050_v20  ;;  %v1054_v48 = vand.u32 3, %v1050_v20  ;;  %p1971_p4 = scmp.lt.s32.totalorder %s1596_s17, %s1596_s17  ;;  %p1972_p5 = scmp.lt.s32.totalorder %s1966_s22, %s1966_s22 }
 0x175   :  { %v1046_v21 = vsel %vm963_vm10, %v1045_v60, %v1044_v56  ;;  %v631_v57 = vmul.f32 %v2456_v30, %v626_v13 }
 0x176   :  { %v1049_v34 = vsel %vm962_vm11, %v2889_v3, %v1046_v21  ;;  %v1470_v46 = vand.u32 3, %v1469_v44  ;;  %vm1059_vm13 = vcmp.eq.s32.totalorder %v1054_v48, 2  ;;  %vm1056_vm1 = vcmp.eq.s32.totalorder %v1054_v48, 0  ;;  %p1973_p6 = por %p1972_p5, %p1971_p4 }
 0x177   :  { %1792 = vcosq.f32 %v1049_v34  ;;  %v635_v37 = vmul.f32 %v631_v57, %v631_v57  ;;  %vm1055_vm2 = vcmp.lt.s32.totalorder %v1054_v48, 2 }
 0x178   :  { %1794 = vsinq.f32 %v1049_v34  ;;  %vm1475_vm14 = vcmp.eq.s32.totalorder %v1470_v46, 2  ;;  %vm1472_vm15 = vcmp.eq.s32.totalorder %v1470_v46, 0  ;;  %vm1471_vm0 = vcmp.lt.s32.totalorder %v1470_v46, 2  ;;  %p1974_p7 = pnand %p1973_p6, %p1967_p3 }
 0x179   :  { %v639_v59 = vadd.f32 1.0, %v635_v37 }
 0x17b   :  { %1796 = vrsqrt.f32 %v639_v59 }
 0x181   :  { %v1793_v32 = vpop.eup %1792 }
 0x182   :  { %v1795_v18 = vpop.eup %1794  ;;  %v1060_v24 = vxor.u32 2147483648, %v1793_v32 }
 0x183   :  { %v1057_v7 = vxor.u32 2147483648, %v1795_v18 }
 0x184   :  { %v1061_v17 = vsel %vm1059_vm13, %v1060_v24, %v1795_v18  ;;  %v1477_v35 = vsel %vm1475_vm14, %v1060_v24, %v1795_v18 }
 0x185   :  { %v1058_v30 = vsel %vm1056_vm1, %v1793_v32, %v1057_v7  ;;  %v1474_v1 = vsel %vm1472_vm15, %v1793_v32, %v1057_v7  ;;  %v1797_v41 = vpop.eup %1796 }
 0x186   :  { %v1062_v12 = vsel %vm1055_vm2, %v1058_v30, %v1061_v17  ;;  %v1478_v11 = vsel %vm1471_vm0, %v1474_v1, %v1477_v35  ;;  %v647_v10 = vmul.f32 %v1797_v41, %v631_v57 }
 0x187   :  { %v1063_v26 = vsel %vm1053_vm3, nan, %v1062_v12  ;;  %v1479_v52 = vsel %vm1053_vm3, nan, %v1478_v11 }
 0x188   :  { %v1495_v42 = vmul.f32 %v1797_v41, %v1479_v52  ;;  %v1483_v29 = vmul.f32 %v1797_v41, %v1063_v26  ;;  %v1499_v33 = vmul.f32 %v1063_v26, %v647_v10  ;;  %v1487_v54 = vmul.f32 %v1479_v52, %v647_v10 }
 0x189   :  { %v1548_v14 = vmul.f32 %v3208_v4, %v647_v10 }
 0x18a   :  { %v1503_v9 = vadd.f32 %v1499_v33, %v1495_v42  ;;  %v1491_v53 = vsub.f32 %v1483_v29, %v1487_v54 }
 0x18b   :  { %v1553_v22 = vmul.f32 %v3095_v40, %v1548_v14 }
 0x18c   :  { %v1536_v45 = vmul.f32 %v1512_v47, %v1503_v9  ;;  %v1520_v62 = vmul.f32 %v1512_v47, %v1491_v53 }
 0x18d   :  { %v1557_v8 = vadd.f32 %v1553_v22, %v2889_v3 }
 0x18e   :  { %v1540_v61 = vadd.f32 %v1536_v45, %v1532_v36  ;;  %v1524_v16 = vadd.f32 %v1520_v62, %v1516_v49 }
 0x18f   :  { %1561 = vst [vmem:[#allocation18 + $0x18] sm:$0xff] %v1557_v8 }
 0x190   :  { %1544 = vst [vmem:[#allocation16 + $0x18] sm:$0xff] %v1540_v61  ;;  %1528 = vst [vmem:[#allocation15 + $0x18] sm:$0xff] %v1524_v16 }
 0x191   :  { %1977 = shalt.err (!%p1974_p7)
}
 0x192   :  { %s1978_s2 = scalar_lea.hbm %s3310_s9, 512 }
 0x193   :  { %p1979_p8 = scmp.ne.s32.totalorder %s3310_s9, %s1978_s2  ;;  %p1982_p9 = scmp.lt.u32.totalorder %s1978_s2, %s3310_s9 }
 0x195   :  { %p1984_p10 = pnand %p1982_p9, %p1979_p8 }
 0x197   :  { %1987 = shalt.err (!%p1984_p10)
}
 0x198   :  { %1601 = dma.vmem_to_hbm [thread:$0]  %s1596_s17, 512, %s3310_s9, [#allocation17], %s2050_s29, %s2050_s29, %s2051_s30  }
 0x199   :  { %s1988_s27 = scalar_lea.vmem %s3242_s20, 512  ;;  %p1993_p12 = scmp.lt.s32.totalorder %s3242_s20, %s3242_s20 }
 0x19a   :  { %p1989_p11 = scmp.ne.s32.totalorder %s3242_s20, %s1988_s27  ;;  %p1994_p13 = scmp.lt.s32.totalorder %s1988_s27, %s1988_s27 }
 0x19c   :  { %p1995_p0 = por %p1994_p13, %p1993_p12 }
 0x19e   :  { %p1996_p1 = pnand %p1995_p0, %p1989_p11 }
 0x1a0   :  { %1999 = shalt.err (!%p1996_p1)
}
 0x1a1   :  { %s2000_s19 = scalar_lea.hbm %s3309_s8, 512 }
 0x1a2   :  { %p2001_p2 = scmp.ne.s32.totalorder %s3309_s8, %s2000_s19  ;;  %p2004_p3 = scmp.lt.u32.totalorder %s2000_s19, %s3309_s8 }
 0x1a4   :  { %p2006_p4 = pnand %p2004_p3, %p2001_p2 }
 0x1a6   :  { %2009 = shalt.err (!%p2006_p4)
}
 0x1a7   :  { %1589 = dma.vmem_to_hbm [thread:$0]  %s3242_s20, 512, %s3309_s8, [#allocation4], %s2050_s29, %s2050_s29, %s2051_s30  }
 0x1a8   :  { %s2010_s4 = scalar_lea.vmem %s3244_s21, 512  ;;  %p2015_p6 = scmp.lt.s32.totalorder %s3244_s21, %s3244_s21 }
 0x1a9   :  { %p2011_p5 = scmp.ne.s32.totalorder %s3244_s21, %s2010_s4  ;;  %p2016_p7 = scmp.lt.s32.totalorder %s2010_s4, %s2010_s4 }
 0x1ab   :  { %p2017_p8 = por %p2016_p7, %p2015_p6 }
 0x1ad   :  { %p2018_p9 = pnand %p2017_p8, %p2011_p5 }
 0x1af   :  { %2021 = shalt.err (!%p2018_p9)
}
 0x1b0   :  { %s2022_s1 = scalar_lea.hbm %s3311_s10, 512 }
 0x1b1   :  { %p2023_p10 = scmp.ne.s32.totalorder %s3311_s10, %s2022_s1  ;;  %p2026_p11 = scmp.lt.u32.totalorder %s2022_s1, %s3311_s10 }
 0x1b3   :  { %p2028_p12 = pnand %p2026_p11, %p2023_p10 }
 0x1b5   :  { %2031 = shalt.err (!%p2028_p12)
}
 0x1b6   :  { %1613 = dma.vmem_to_hbm [thread:$0]  %s3244_s21, 512, %s3311_s10, [#allocation17], %s2050_s29, %s2050_s29, %s2051_s30  }
 0x1b7   :  { %2042 = dma.done.wait [#allocation4], 512  }
 0x1b8   :  { %2043 = vsyncadd [#allocation4], 4294966784 }
 0x1b9   :  { %2044 = dma.done.wait [#allocation17], 1024  }
 0x1ba   :  { %2045 = vsyncadd [#allocation17], 4294966272 }
 0x1bb   :  { %2046 = dma.done.wait [#allocation20], 512  }
 0x1bc   :  { %2047 = vsyncadd [#allocation20], 4294966784 }
 0x1bd   :  { %1638 = vsyncpa [#allocation3], 1 }
 0x1be   :  { %1639 = vsyncpa [#allocation8], 1 }
 0x1bf   :  { %1640 = vsyncpa [#allocation11], 1 }
 0x1c0   :  { %1641 = vsyncpa [#allocation14], 1 }
 0x1c1   :  { %1642 = vsyncpa [#allocation4], 1 }
 0x1c2   :  { %1643 = vsyncpa [#allocation17], 1 }
 0x1c3   :  { %1644 = vsyncpa [#allocation20], 1 }
 0x1c4   :  { %1645 = vsyncpa [#allocation5], 1 }

</bundles_post_ra>
